<compile_context>
chip_gen: v5e
topology: v5e:2x2
jax: 0.10.0
libtpu: 0.0.40
codegen_flags: <defaults>
</compile_context>

<pallas_src>
import functools
import math
import numpy as np
import jax
import jax.numpy as jnp
from jax.experimental import pallas as pl
from jax.experimental.pallas import tpu as pltpu

_LANE = 128
_SUBLANE = 8
# recurrence inputs/outputs below this footprint run in the fused (single
# invocation, fully VMEM-resident) kernel; above it, fall back to streaming.
_FUSED_VMEM_BUDGET = 8 * 1024 * 1024


# ---------------------------------------------------------------------------
# helpers
# ---------------------------------------------------------------------------
def _round_up(x, m):
    return ((x + m - 1) // m) * m


def _full_spec(shape):
    # whole-array block (no grid): block_shape == array shape is always legal
    return pl.BlockSpec(shape, lambda *_: (0,) * len(shape))


def _pad_gate_mat(w, rows_pad, H, Hp):
    """(rows, 3H) gate-stacked [r|z|n] weight -> (rows_pad, 3*Hp) lane-dense."""
    rows = w.shape[0]
    out = jnp.zeros((rows_pad, 3 * Hp), jnp.float32)
    for g in range(3):
        out = out.at[:rows, g * Hp:g * Hp + H].set(w[:, g * H:(g + 1) * H])
    return out


def _pad_gate_vec(b, H, Hp):
    """(3H,) gate-stacked bias -> (1, 3*Hp) lane-dense."""
    out = jnp.zeros((1, 3 * Hp), jnp.float32)
    for g in range(3):
        out = out.at[0, g * Hp:g * Hp + H].set(b[g * H:(g + 1) * H])
    return out


# ---------------------------------------------------------------------------
# kernel 1: fused matmul + bias  (GRU input projection for ALL timesteps,
#           and the classification head).  Shapes here are tiny, so a single
#           whole-array block is used; tile with an (M,N,K) grid once any
#           dimension grows beyond a few hundred.
# ---------------------------------------------------------------------------
def _matmul_bias_kernel(a_ref, w_ref, b_ref, o_ref):
    o_ref[...] = (jnp.dot(a_ref[...], w_ref[...],
                          preferred_element_type=jnp.float32)
                  + b_ref[...])


def matmul_bias(a, w, b):
    a = a.astype(jnp.float32)
    M, K = a.shape
    _, N = w.shape
    return pl.pallas_call(
        _matmul_bias_kernel,
        out_shape=jax.ShapeDtypeStruct((M, N), jnp.float32),
        in_specs=[_full_spec((M, K)), _full_spec((K, N)), _full_spec((1, N))],
        out_specs=_full_spec((M, N)),
    )(a, w, b)


# ---------------------------------------------------------------------------
# kernel 2a: fused GRU recurrence (torch.nn.GRU gate equations), single
#            pallas_call, everything VMEM-resident, serial loop over time
#            inside the kernel.  Only h @ Whh + gate elementwise math is on
#            the serial path; the hidden state lives in vregs across steps.
# ---------------------------------------------------------------------------
def _gru_fused_kernel(gi_ref, whh_ref, bhh_ref, h0_ref, o_ref, *, unroll):
    V = gi_ref.shape[0]
    Bp, Hp = h0_ref.shape

    # hoist the bias broadcast out of the time loop (not CSE'd by JAX)
    bhh = jnp.broadcast_to(bhh_ref[...], (Bp, 3 * Hp))

    def body(t, h):
        gi = gi_ref[t]                                        # (Bp, 3*Hp)
        gh = jnp.dot(h, whh_ref[...],
                     preferred_element_type=jnp.float32) + bhh

        # lane-aligned gate slices (each exactly Hp = 128 lanes wide)
        i_r, i_z, i_n = gi[:, :Hp], gi[:, Hp:2 * Hp], gi[:, 2 * Hp:]
        h_r, h_z, h_n = gh[:, :Hp], gh[:, Hp:2 * Hp], gh[:, 2 * Hp:]

        r = jax.nn.sigmoid(i_r + h_r)
        z = jax.nn.sigmoid(i_z + h_z)
        n = jnp.tanh(i_n + r * h_n)
        hn = (1.0 - z) * n + z * h

        o_ref[t] = hn
        return hn

    jax.lax.fori_loop(0, V, body, h0_ref[...], unroll=unroll)


def _gru_recurrence_fused(gi, whh, bhh, h0):
    V, Bp, G = gi.shape
    Hp = h0.shape[1]
    unroll = True if V <= 32 else 8
    return pl.pallas_call(
        functools.partial(_gru_fused_kernel, unroll=unroll),
        out_shape=jax.ShapeDtypeStruct((V, Bp, Hp), jnp.float32),
        in_specs=[_full_spec((V, Bp, G)), _full_spec((Hp, G)),
                  _full_spec((1, G)), _full_spec((Bp, Hp))],
        out_specs=_full_spec((V, Bp, Hp)),
    )(gi, whh, bhh, h0)


# ---------------------------------------------------------------------------
# kernel 2b: streaming GRU recurrence fallback for long sequences.
#   grid=(V,) -> one grid step per timestep; gi_t streamed in (double
#   buffered), hidden state carried across steps in a VMEM scratch.
# ---------------------------------------------------------------------------
def _gru_step_kernel(gi_ref, whh_ref, bhh_ref, h0_ref, o_ref, h_scr):
    t = pl.program_id(0)

    @pl.when(t == 0)
    def _():
        h_scr[...] = h0_ref[...]

    h = h_scr[...]                                           # (Bp, Hp)
    Hp = h.shape[-1]

    gi = gi_ref[0]                                           # (Bp, 3*Hp)
    gh = (jnp.dot(h, whh_ref[...],
                  preferred_element_type=jnp.float32)
          + bhh_ref[...])                                    # (Bp, 3*Hp)

    i_r, i_z, i_n = gi[:, :Hp], gi[:, Hp:2 * Hp], gi[:, 2 * Hp:]
    h_r, h_z, h_n = gh[:, :Hp], gh[:, Hp:2 * Hp], gh[:, 2 * Hp:]

    r = jax.nn.sigmoid(i_r + h_r)
    z = jax.nn.sigmoid(i_z + h_z)
    n = jnp.tanh(i_n + r * h_n)
    hn = (1.0 - z) * n + z * h

    h_scr[...] = hn
    o_ref[0] = hn


def _gru_recurrence_streamed(gi, whh, bhh, h0):
    V, Bp, G = gi.shape
    Hp = h0.shape[1]
    return pl.pallas_call(
        _gru_step_kernel,
        out_shape=jax.ShapeDtypeStruct((V, Bp, Hp), jnp.float32),
        grid_spec=pltpu.PrefetchScalarGridSpec(
            num_scalar_prefetch=0,
            grid=(V,),
            in_specs=[pl.BlockSpec((1, Bp, G), lambda t: (t, 0, 0)),
                      pl.BlockSpec((Hp, G), lambda t: (0, 0)),
                      pl.BlockSpec((1, G), lambda t: (0, 0)),
                      pl.BlockSpec((Bp, Hp), lambda t: (0, 0))],
            out_specs=pl.BlockSpec((1, Bp, Hp), lambda t: (t, 0, 0)),
            scratch_shapes=[pltpu.VMEM((Bp, Hp), jnp.float32)]),
        compiler_params=pltpu.CompilerParams(
            dimension_semantics=("arbitrary",)),
    )(gi, whh, bhh, h0)


def gru_recurrence(gi, whh, bhh, h0):
    V, Bp, G = gi.shape
    Hp = h0.shape[1]
    footprint = 4 * (V * Bp * G + Hp * G + G + Bp * Hp + V * Bp * Hp)
    if footprint <= _FUSED_VMEM_BUDGET:
        return _gru_recurrence_fused(gi, whh, bhh, h0)
    return _gru_recurrence_streamed(gi, whh, bhh, h0)


# ---------------------------------------------------------------------------
# parameter init (PyTorch-equivalent semantics)
# ---------------------------------------------------------------------------
def init_params(key, cfg):
    H, I = cfg['hidden_dim'], cfg['input_dim']
    N, L, O = cfg['visit_code_num'], cfg['layers'], cfg['out_dim']
    Hp, Op = _round_up(H, _LANE), _round_up(O, _LANE)
    D0 = N * I
    ks = iter(jax.random.split(key, 6 + 4 * L))

    raw = {}
    emb = jax.random.normal(next(ks), (cfg['num_nodes'] + 1, I), jnp.float32)
    raw['node_embed'] = emb.at[0].set(0.0)                   # padding_idx=0
    a = math.sqrt(6.0 / (1 + H))                             # xavier_uniform
    raw['h_0'] = jax.random.uniform(next(ks), (L, 1, H), jnp.float32, -a, a)
    bound = 1.0 / math.sqrt(H)
    raw['gru'] = []
    for l in range(L):
        Din = D0 if l == 0 else H
        raw['gru'].append({
            'wih': jax.random.uniform(next(ks), (Din, 3 * H), jnp.float32,
                                      -bound, bound),
            'whh': jax.random.uniform(next(ks), (H, 3 * H), jnp.float32,
                                      -bound, bound),
            'bih': jax.random.uniform(next(ks), (3 * H,), jnp.float32,
                                      -bound, bound),
            'bhh': jax.random.uniform(next(ks), (3 * H,), jnp.float32,
                                      -bound, bound),
        })
    raw['head_w'] = jax.random.uniform(next(ks), (H, O), jnp.float32,
                                       -bound, bound)
    raw['head_b'] = jax.random.uniform(next(ks), (O,), jnp.float32,
                                       -bound, bound)

    # lane-dense / padded variants consumed by the kernels
    p = {'node_embed': raw['node_embed'], 'h_0': raw['h_0'], 'gru': []}
    for l, lp in enumerate(raw['gru']):
        rows_pad = D0 if l == 0 else Hp
        p['gru'].append({
            'wih_pad': _pad_gate_mat(lp['wih'], rows_pad, H, Hp),
            'whh_pad': _pad_gate_mat(lp['whh'], Hp, H, Hp),
            'bih_pad': _pad_gate_vec(lp['bih'], H, Hp),
            'bhh_pad': _pad_gate_vec(lp['bhh'], H, Hp),
        })
    p['head_w_pad'] = jnp.zeros((Hp, Op), jnp.float32).at[:H, :O].set(
        raw['head_w'])
    p['head_b_pad'] = jnp.zeros((1, Op), jnp.float32).at[0, :O].set(
        raw['head_b'])
    return p, raw


# ---------------------------------------------------------------------------
# forward pass (matches GRU.forward of the PyTorch spec)
# ---------------------------------------------------------------------------
def gru_forward(params, cfg, node_ids, edge_idx, edge_attr, visit_times,
                visit_order, attn_mask, **kwargs):
    # edge_idx / edge_attr / visit_times / visit_order are unused (as in torch)
    H, I, O = cfg['hidden_dim'], cfg['input_dim'], cfg['out_dim']
    Hp = _round_up(H, _LANE)
    B, V, N = node_ids.shape
    Bp = _round_up(max(B, _SUBLANE), _SUBLANE)   # fill >= 8 sublanes

    # ---- code-embedding gather + flatten codes of each visit ----
    # TODO(synk): embedding gather stays in XLA (no benefit from a Pallas
    #             gather kernel at these sizes).
    x = params['node_embed'][node_ids]                       # (B, V, N, I)
    x = x.reshape(B, V, N * I).astype(jnp.float32)

    # ---- pad batch to sublane multiple, go time-major ----
    x_pad = jnp.zeros((Bp, V, N * I), jnp.float32).at[:B].set(x)
    x_t = jnp.transpose(x_pad, (1, 0, 2))                    # (V, Bp, D)

    # ---- stacked GRU ----
    for l, lp in enumerate(params['gru']):
        Vv, _, D = x_t.shape
        # hoisted input projection: one lane-dense (V*Bp, D) x (D, 3*Hp) matmul
        gi = matmul_bias(x_t.reshape(Vv * Bp, D), lp['wih_pad'], lp['bih_pad'])
        gi = gi.reshape(Vv, Bp, 3 * Hp)
        h0 = jnp.zeros((Bp, Hp), jnp.float32).at[:, :H].set(
            jnp.tile(params['h_0'][l], (Bp, 1)))
        x_t = gru_recurrence(gi, lp['whh_pad'], lp['bhh_pad'], h0)  # (V,Bp,Hp)

    # ---- pick hidden state of last valid visit per patient ----
    visit_valid = ~jnp.all(attn_mask, axis=-1)               # (B, V)
    last_idx = jnp.sum(visit_valid.astype(jnp.int32), axis=-1) - 1
    last_idx_pad = jnp.zeros((Bp,), jnp.int32).at[:B].set(last_idx)
    x_sel = x_t[last_idx_pad, jnp.arange(Bp)]                # (Bp, Hp)

    # ---- head (lane-dense padded output, sliced back) ----
    logits_pad = matmul_bias(x_sel, params['head_w_pad'], params['head_b_pad'])
    logits = logits_pad[:B, :O]

    return {'logits': [logits], 'prototypes': None, 'embeddings': None,
            'scores': None}


# ---------------------------------------------------------------------------
# plain-JAX reference (unpadded weights) for a sanity check
# ---------------------------------------------------------------------------
def reference_forward(raw, cfg, node_ids, attn_mask):
    H, I = cfg['hidden_dim'], cfg['input_dim']
    B, V, N = node_ids.shape
    x = raw['node_embed'][node_ids].reshape(B, V, N * I).astype(jnp.float32)
    seq = x
    for l, lp in enumerate(raw['gru']):
        def step(h, x_t, lp=lp):
            gi = x_t @ lp['wih'] + lp['bih']
            gh = h @ lp['whh'] + lp['bhh']
            i_r, i_z, i_n = jnp.split(gi, 3, axis=-1)
            h_r, h_z, h_n = jnp.split(gh, 3, axis=-1)
            r = jax.nn.sigmoid(i_r + h_r)
            z = jax.nn.sigmoid(i_z + h_z)
            n = jnp.tanh(i_n + r * h_n)
            hn = (1.0 - z) * n + z * h
            return hn, hn
        h0 = jnp.tile(raw['h_0'][l], (B, 1))
        _, ys = jax.lax.scan(step, h0, jnp.transpose(seq, (1, 0, 2)))
        seq = jnp.transpose(ys, (1, 0, 2))
    visit_valid = ~jnp.all(attn_mask, axis=-1)
    last_idx = jnp.sum(visit_valid.astype(jnp.int32), axis=-1) - 1
    x_sel = seq[jnp.arange(B), last_idx]
    return x_sel @ raw['head_w'] + raw['head_b']


# ---------------------------------------------------------------------------
# main
# ---------------------------------------------------------------------------
if __name__ == "__main__":
    cfg = dict(num_nodes=20, visit_thresh=8, visit_code_num=6,
               input_dim=32, hidden_dim=32, layers=1, out_dim=5)
    B, V, N = 2, cfg['visit_thresh'], cfg['visit_code_num']

    key = jax.random.PRNGKey(0)
    k_param, k_ids = jax.random.split(key, 2)
    params, raw = init_params(k_param, cfg)

    # synthetic patient batch (attn_mask True = padded position)
    valid_visits = np.array([6, 4])
    valid_codes = 4
    attn_mask_np = np.ones((B, V, N), dtype=bool)
    for b in range(B):
        attn_mask_np[b, :valid_visits[b], :valid_codes] = False
    attn_mask = jnp.asarray(attn_mask_np)

    node_ids = jax.random.randint(k_ids, (B, V, N), 1, cfg['num_nodes'] + 1)
    node_ids = jnp.where(attn_mask, 0, node_ids)
    visit_order = jnp.tile(jnp.arange(V)[None, :], (B, 1))
    visit_times = jnp.zeros((B, V), jnp.int32)
    edge_idx = jnp.zeros((2, 1), jnp.int32)      # unused by forward
    edge_attr = jnp.zeros((1,), jnp.int32)       # unused by forward

    fwd = jax.jit(lambda p, ids, vt, vo, m: gru_forward(
        p, cfg, ids, edge_idx, edge_attr, vt, vo, m))
    out = fwd(params, node_ids, visit_times, visit_order, attn_mask)
    logits = out['logits'][0]
    jax.block_until_ready(logits)
    assert logits.shape == (B, cfg['out_dim'])

    # sanity check against the plain-JAX reference
    ref = reference_forward(raw, cfg, node_ids, attn_mask)
    assert float(jnp.max(jnp.abs(logits - ref))) < 5e-2

    print("KERNEL_OK")
</pallas_src>

<mosaic_0001>
module attributes {stable_mosaic.version = 11 : i64} {
  func.func @_matmul_bias_kernel(%arg0: memref<64x192xf32, #tpu.memory_space<vmem>>, %arg1: memref<192x384xf32, #tpu.memory_space<vmem>>, %arg2: memref<1x384xf32, #tpu.memory_space<vmem>>, %arg3: memref<64x384xf32, #tpu.memory_space<vmem>>) attributes {dimension_semantics = [], scalar_prefetch = 0 : i64, scratch_operands = 0 : i64, tpu.core_type = #tpu.core_type<tc>} {
    %c0 = arith.constant 0 : index
    %c0_0 = arith.constant 0 : index
    %0 = vector.load %arg0[%c0, %c0_0] : memref<64x192xf32, #tpu.memory_space<vmem>>, vector<64x192xf32>
    %c0_1 = arith.constant 0 : index
    %c0_2 = arith.constant 0 : index
    %1 = vector.load %arg1[%c0_1, %c0_2] : memref<192x384xf32, #tpu.memory_space<vmem>>, vector<192x384xf32>
    %cst = arith.constant dense<0.000000e+00> : vector<64x384xf32>
    %2 = tpu.matmul %0, %1, %cst {dimension_numbers = #tpu.dot_dimension_numbers<[1], [0], [0], [1], [0, 0, 1, 1], [], []>} : vector<64x192xf32>, vector<192x384xf32>, vector<64x384xf32> -> vector<64x384xf32>
    %c0_3 = arith.constant 0 : index
    %c0_4 = arith.constant 0 : index
    %3 = vector.load %arg2[%c0_3, %c0_4] : memref<1x384xf32, #tpu.memory_space<vmem>>, vector<1x384xf32>
    %4 = vector.broadcast %3 : vector<1x384xf32> to vector<64x384xf32>
    %5 = arith.addf %2, %4 : vector<64x384xf32>
    %c0_5 = arith.constant 0 : index
    %c0_6 = arith.constant 0 : index
    %6 = vector.load %arg3[%c0_5, %c0_6] : memref<64x384xf32, #tpu.memory_space<vmem>>, vector<64x384xf32>
    tpu.vector_store %arg3[%c0_5, %c0_6], %5 {strides = array<i32>} : memref<64x384xf32, #tpu.memory_space<vmem>>, vector<64x384xf32>,
    return
  }
}

module attributes {stable_mosaic.version = 11 : i64} {
  func.func @_gru_fused_kernel(%arg0: memref<8x8x384xf32, #tpu.memory_space<vmem>>, %arg1: memref<128x384xf32, #tpu.memory_space<vmem>>, %arg2: memref<1x384xf32, #tpu.memory_space<vmem>>, %arg3: memref<8x128xf32, #tpu.memory_space<vmem>>, %arg4: memref<8x8x128xf32, #tpu.memory_space<vmem>>) attributes {dimension_semantics = [], scalar_prefetch = 0 : i64, scratch_operands = 0 : i64, tpu.core_type = #tpu.core_type<tc>} {
    %c0 = arith.constant 0 : index
    %c0_0 = arith.constant 0 : index
    %0 = vector.load %arg2[%c0, %c0_0] : memref<1x384xf32, #tpu.memory_space<vmem>>, vector<1x384xf32>
    %1 = vector.shape_cast %0 : vector<1x384xf32> to vector<1x384xf32>
    %2 = vector.broadcast %1 : vector<1x384xf32> to vector<8x384xf32>
    %c0_1 = arith.constant 0 : index
    %c0_2 = arith.constant 0 : index
    %3 = vector.load %arg3[%c0_1, %c0_2] : memref<8x128xf32, #tpu.memory_space<vmem>>, vector<8x128xf32>
    %c0_i32 = arith.constant 0 : i32
    %4 = arith.index_cast %c0_i32 : i32 to index
    %c0_3 = arith.constant 0 : index
    %c0_4 = arith.constant 0 : index
    %5 = vector.load %arg0[%4, %c0_3, %c0_4] : memref<8x8x384xf32, #tpu.memory_space<vmem>>, vector<1x8x384xf32>
    %6 = vector.shape_cast %5 : vector<1x8x384xf32> to vector<8x384xf32>
    %c0_5 = arith.constant 0 : index
    %c0_6 = arith.constant 0 : index
    %7 = vector.load %arg1[%c0_5, %c0_6] : memref<128x384xf32, #tpu.memory_space<vmem>>, vector<128x384xf32>
    %cst = arith.constant dense<0.000000e+00> : vector<8x384xf32>
    %8 = tpu.matmul %3, %7, %cst {dimension_numbers = #tpu.dot_dimension_numbers<[1], [0], [0], [1], [0, 0, 1, 1], [], []>} : vector<8x128xf32>, vector<128x384xf32>, vector<8x384xf32> -> vector<8x384xf32>
    %9 = arith.addf %8, %2 : vector<8x384xf32>
    %10 = vector.extract_strided_slice %6 {offsets = [0, 0], sizes = [8, 128], strides = [1, 1]} : vector<8x384xf32> to vector<8x128xf32>
    %11 = vector.extract_strided_slice %6 {offsets = [0, 128], sizes = [8, 128], strides = [1, 1]} : vector<8x384xf32> to vector<8x128xf32>
    %12 = vector.extract_strided_slice %6 {offsets = [0, 256], sizes = [8, 128], strides = [1, 1]} : vector<8x384xf32> to vector<8x128xf32>
    %13 = vector.extract_strided_slice %9 {offsets = [0, 0], sizes = [8, 128], strides = [1, 1]} : vector<8x384xf32> to vector<8x128xf32>
    %14 = vector.extract_strided_slice %9 {offsets = [0, 128], sizes = [8, 128], strides = [1, 1]} : vector<8x384xf32> to vector<8x128xf32>
    %15 = vector.extract_strided_slice %9 {offsets = [0, 256], sizes = [8, 128], strides = [1, 1]} : vector<8x384xf32> to vector<8x128xf32>
    %16 = arith.addf %10, %13 : vector<8x128xf32>
    %17 = arith.negf %16 : vector<8x128xf32>
    %18 = math.exp %17 : vector<8x128xf32>
    %cst_7 = arith.constant 1.000000e+00 : f32
    %19 = vector.broadcast %cst_7 : f32 to vector<8x128xf32>
    %20 = arith.addf %19, %18 : vector<8x128xf32>
    %21 = arith.divf %19, %20 : vector<8x128xf32>
    %22 = arith.addf %11, %14 : vector<8x128xf32>
    %23 = arith.negf %22 : vector<8x128xf32>
    %24 = math.exp %23 : vector<8x128xf32>
    %cst_8 = arith.constant 1.000000e+00 : f32
    %25 = vector.broadcast %cst_8 : f32 to vector<8x128xf32>
    %26 = arith.addf %25, %24 : vector<8x128xf32>
    %27 = arith.divf %25, %26 : vector<8x128xf32>
    %28 = arith.mulf %21, %15 : vector<8x128xf32>
    %29 = arith.addf %12, %28 : vector<8x128xf32>
    %30 = math.tanh %29 : vector<8x128xf32>
    %cst_9 = arith.constant 1.000000e+00 : f32
    %31 = vector.broadcast %cst_9 : f32 to vector<8x128xf32>
    %32 = arith.subf %31, %27 : vector<8x128xf32>
    %33 = arith.mulf %32, %30 : vector<8x128xf32>
    %34 = arith.mulf %27, %3 : vector<8x128xf32>
    %35 = arith.addf %33, %34 : vector<8x128xf32>
    %36 = arith.index_cast %c0_i32 : i32 to index
    %c0_10 = arith.constant 0 : index
    %c0_11 = arith.constant 0 : index
    %37 = vector.load %arg4[%36, %c0_10, %c0_11] : memref<8x8x128xf32, #tpu.memory_space<vmem>>, vector<1x8x128xf32>
    %38 = vector.shape_cast %37 : vector<1x8x128xf32> to vector<8x128xf32>
    %39 = vector.shape_cast %35 : vector<8x128xf32> to vector<1x8x128xf32>
    tpu.vector_store %arg4[%36, %c0_10, %c0_11], %39 {strides = array<i32>} : memref<8x8x128xf32, #tpu.memory_space<vmem>>, vector<1x8x128xf32>,
    %c1_i32 = arith.constant 1 : i32
    %40 = arith.index_cast %c1_i32 : i32 to index
    %c0_12 = arith.constant 0 : index
    %c0_13 = arith.constant 0 : index
    %41 = vector.load %arg0[%40, %c0_12, %c0_13] : memref<8x8x384xf32, #tpu.memory_space<vmem>>, vector<1x8x384xf32>
    %42 = vector.shape_cast %41 : vector<1x8x384xf32> to vector<8x384xf32>
    %c0_14 = arith.constant 0 : index
    %c0_15 = arith.constant 0 : index
    %43 = vector.load %arg1[%c0_14, %c0_15] : memref<128x384xf32, #tpu.memory_space<vmem>>, vector<128x384xf32>
    %cst_16 = arith.constant dense<0.000000e+00> : vector<8x384xf32>
    %44 = tpu.matmul %35, %43, %cst_16 {dimension_numbers = #tpu.dot_dimension_numbers<[1], [0], [0], [1], [0, 0, 1, 1], [], []>} : vector<8x128xf32>, vector<128x384xf32>, vector<8x384xf32> -> vector<8x384xf32>
    %45 = arith.addf %44, %2 : vector<8x384xf32>
    %46 = vector.extract_strided_slice %42 {offsets = [0, 0], sizes = [8, 128], strides = [1, 1]} : vector<8x384xf32> to vector<8x128xf32>
    %47 = vector.extract_strided_slice %42 {offsets = [0, 128], sizes = [8, 128], strides = [1, 1]} : vector<8x384xf32> to vector<8x128xf32>
    %48 = vector.extract_strided_slice %42 {offsets = [0, 256], sizes = [8, 128], strides = [1, 1]} : vector<8x384xf32> to vector<8x128xf32>
    %49 = vector.extract_strided_slice %45 {offsets = [0, 0], sizes = [8, 128], strides = [1, 1]} : vector<8x384xf32> to vector<8x128xf32>
    %50 = vector.extract_strided_slice %45 {offsets = [0, 128], sizes = [8, 128], strides = [1, 1]} : vector<8x384xf32> to vector<8x128xf32>
    %51 = vector.extract_strided_slice %45 {offsets = [0, 256], sizes = [8, 128], strides = [1, 1]} : vector<8x384xf32> to vector<8x128xf32>
    %52 = arith.addf %46, %49 : vector<8x128xf32>
    %53 = arith.negf %52 : vector<8x128xf32>
    %54 = math.exp %53 : vector<8x128xf32>
    %cst_17 = arith.constant 1.000000e+00 : f32
    %55 = vector.broadcast %cst_17 : f32 to vector<8x128xf32>
    %56 = arith.addf %55, %54 : vector<8x128xf32>
    %57 = arith.divf %55, %56 : vector<8x128xf32>
    %58 = arith.addf %47, %50 : vector<8x128xf32>
    %59 = arith.negf %58 : vector<8x128xf32>
    %60 = math.exp %59 : vector<8x128xf32>
    %cst_18 = arith.constant 1.000000e+00 : f32
    %61 = vector.broadcast %cst_18 : f32 to vector<8x128xf32>
    %62 = arith.addf %61, %60 : vector<8x128xf32>
    %63 = arith.divf %61, %62 : vector<8x128xf32>
    %64 = arith.mulf %57, %51 : vector<8x128xf32>
    %65 = arith.addf %48, %64 : vector<8x128xf32>
    %66 = math.tanh %65 : vector<8x128xf32>
    %cst_19 = arith.constant 1.000000e+00 : f32
    %67 = vector.broadcast %cst_19 : f32 to vector<8x128xf32>
    %68 = arith.subf %67, %63 : vector<8x128xf32>
    %69 = arith.mulf %68, %66 : vector<8x128xf32>
    %70 = arith.mulf %63, %35 : vector<8x128xf32>
    %71 = arith.addf %69, %70 : vector<8x128xf32>
    %72 = arith.index_cast %c1_i32 : i32 to index
    %c0_20 = arith.constant 0 : index
    %c0_21 = arith.constant 0 : index
    %73 = vector.load %arg4[%72, %c0_20, %c0_21] : memref<8x8x128xf32, #tpu.memory_space<vmem>>, vector<1x8x128xf32>
    %74 = vector.shape_cast %73 : vector<1x8x128xf32> to vector<8x128xf32>
    %75 = vector.shape_cast %71 : vector<8x128xf32> to vector<1x8x128xf32>
    tpu.vector_store %arg4[%72, %c0_20, %c0_21], %75 {strides = array<i32>} : memref<8x8x128xf32, #tpu.memory_space<vmem>>, vector<1x8x128xf32>,
    %c2_i32 = arith.constant 2 : i32
    %76 = arith.index_cast %c2_i32 : i32 to index
    %c0_22 = arith.constant 0 : index
    %c0_23 = arith.constant 0 : index
    %77 = vector.load %arg0[%76, %c0_22, %c0_23] : memref<8x8x384xf32, #tpu.memory_space<vmem>>, vector<1x8x384xf32>
    %78 = vector.shape_cast %77 : vector<1x8x384xf32> to vector<8x384xf32>
    %c0_24 = arith.constant 0 : index
    %c0_25 = arith.constant 0 : index
    %79 = vector.load %arg1[%c0_24, %c0_25] : memref<128x384xf32, #tpu.memory_space<vmem>>, vector<128x384xf32>
    %cst_26 = arith.constant dense<0.000000e+00> : vector<8x384xf32>
    %80 = tpu.matmul %71, %79, %cst_26 {dimension_numbers = #tpu.dot_dimension_numbers<[1], [0], [0], [1], [0, 0, 1, 1], [], []>} : vector<8x128xf32>, vector<128x384xf32>, vector<8x384xf32> -> vector<8x384xf32>
    %81 = arith.addf %80, %2 : vector<8x384xf32>
    %82 = vector.extract_strided_slice %78 {offsets = [0, 0], sizes = [8, 128], strides = [1, 1]} : vector<8x384xf32> to vector<8x128xf32>
    %83 = vector.extract_strided_slice %78 {offsets = [0, 128], sizes = [8, 128], strides = [1, 1]} : vector<8x384xf32> to vector<8x128xf32>
    %84 = vector.extract_strided_slice %78 {offsets = [0, 256], sizes = [8, 128], strides = [1, 1]} : vector<8x384xf32> to vector<8x128xf32>
    %85 = vector.extract_strided_slice %81 {offsets = [0, 0], sizes = [8, 128], strides = [1, 1]} : vector<8x384xf32> to vector<8x128xf32>
    %86 = vector.extract_strided_slice %81 {offsets = [0, 128], sizes = [8, 128], strides = [1, 1]} : vector<8x384xf32> to vector<8x128xf32>
    %87 = vector.extract_strided_slice %81 {offsets = [0, 256], sizes = [8, 128], strides = [1, 1]} : vector<8x384xf32> to vector<8x128xf32>
    %88 = arith.addf %82, %85 : vector<8x128xf32>
    %89 = arith.negf %88 : vector<8x128xf32>
    %90 = math.exp %89 : vector<8x128xf32>
    %cst_27 = arith.constant 1.000000e+00 : f32
    %91 = vector.broadcast %cst_27 : f32 to vector<8x128xf32>
    %92 = arith.addf %91, %90 : vector<8x128xf32>
    %93 = arith.divf %91, %92 : vector<8x128xf32>
    %94 = arith.addf %83, %86 : vector<8x128xf32>
    %95 = arith.negf %94 : vector<8x128xf32>
    %96 = math.exp %95 : vector<8x128xf32>
    %cst_28 = arith.constant 1.000000e+00 : f32
    %97 = vector.broadcast %cst_28 : f32 to vector<8x128xf32>
    %98 = arith.addf %97, %96 : vector<8x128xf32>
    %99 = arith.divf %97, %98 : vector<8x128xf32>
    %100 = arith.mulf %93, %87 : vector<8x128xf32>
    %101 = arith.addf %84, %100 : vector<8x128xf32>
    %102 = math.tanh %101 : vector<8x128xf32>
    %cst_29 = arith.constant 1.000000e+00 : f32
    %103 = vector.broadcast %cst_29 : f32 to vector<8x128xf32>
    %104 = arith.subf %103, %99 : vector<8x128xf32>
    %105 = arith.mulf %104, %102 : vector<8x128xf32>
    %106 = arith.mulf %99, %71 : vector<8x128xf32>
    %107 = arith.addf %105, %106 : vector<8x128xf32>
    %108 = arith.index_cast %c2_i32 : i32 to index
    %c0_30 = arith.constant 0 : index
    %c0_31 = arith.constant 0 : index
    %109 = vector.load %arg4[%108, %c0_30, %c0_31] : memref<8x8x128xf32, #tpu.memory_space<vmem>>, vector<1x8x128xf32>
    %110 = vector.shape_cast %109 : vector<1x8x128xf32> to vector<8x128xf32>
    %111 = vector.shape_cast %107 : vector<8x128xf32> to vector<1x8x128xf32>
    tpu.vector_store %arg4[%108, %c0_30, %c0_31], %111 {strides = array<i32>} : memref<8x8x128xf32, #tpu.memory_space<vmem>>, vector<1x8x128xf32>,
    %c3_i32 = arith.constant 3 : i32
    %112 = arith.index_cast %c3_i32 : i32 to index
    %c0_32 = arith.constant 0 : index
    %c0_33 = arith.constant 0 : index
    %113 = vector.load %arg0[%112, %c0_32, %c0_33] : memref<8x8x384xf32, #tpu.memory_space<vmem>>, vector<1x8x384xf32>
    %114 = vector.shape_cast %113 : vector<1x8x384xf32> to vector<8x384xf32>
    %c0_34 = arith.constant 0 : index
    %c0_35 = arith.constant 0 : index
    %115 = vector.load %arg1[%c0_34, %c0_35] : memref<128x384xf32, #tpu.memory_space<vmem>>, vector<128x384xf32>
    %cst_36 = arith.constant dense<0.000000e+00> : vector<8x384xf32>
    %116 = tpu.matmul %107, %115, %cst_36 {dimension_numbers = #tpu.dot_dimension_numbers<[1], [0], [0], [1], [0, 0, 1, 1], [], []>} : vector<8x128xf32>, vector<128x384xf32>, vector<8x384xf32> -> vector<8x384xf32>
    %117 = arith.addf %116, %2 : vector<8x384xf32>
    %118 = vector.extract_strided_slice %114 {offsets = [0, 0], sizes = [8, 128], strides = [1, 1]} : vector<8x384xf32> to vector<8x128xf32>
    %119 = vector.extract_strided_slice %114 {offsets = [0, 128], sizes = [8, 128], strides = [1, 1]} : vector<8x384xf32> to vector<8x128xf32>
    %120 = vector.extract_strided_slice %114 {offsets = [0, 256], sizes = [8, 128], strides = [1, 1]} : vector<8x384xf32> to vector<8x128xf32>
    %121 = vector.extract_strided_slice %117 {offsets = [0, 0], sizes = [8, 128], strides = [1, 1]} : vector<8x384xf32> to vector<8x128xf32>
    %122 = vector.extract_strided_slice %117 {offsets = [0, 128], sizes = [8, 128], strides = [1, 1]} : vector<8x384xf32> to vector<8x128xf32>
    %123 = vector.extract_strided_slice %117 {offsets = [0, 256], sizes = [8, 128], strides = [1, 1]} : vector<8x384xf32> to vector<8x128xf32>
    %124 = arith.addf %118, %121 : vector<8x128xf32>
    %125 = arith.negf %124 : vector<8x128xf32>
    %126 = math.exp %125 : vector<8x128xf32>
    %cst_37 = arith.constant 1.000000e+00 : f32
    %127 = vector.broadcast %cst_37 : f32 to vector<8x128xf32>
    %128 = arith.addf %127, %126 : vector<8x128xf32>
    %129 = arith.divf %127, %128 : vector<8x128xf32>
    %130 = arith.addf %119, %122 : vector<8x128xf32>
    %131 = arith.negf %130 : vector<8x128xf32>
    %132 = math.exp %131 : vector<8x128xf32>
    %cst_38 = arith.constant 1.000000e+00 : f32
    %133 = vector.broadcast %cst_38 : f32 to vector<8x128xf32>
    %134 = arith.addf %133, %132 : vector<8x128xf32>
    %135 = arith.divf %133, %134 : vector<8x128xf32>
    %136 = arith.mulf %129, %123 : vector<8x128xf32>
    %137 = arith.addf %120, %136 : vector<8x128xf32>
    %138 = math.tanh %137 : vector<8x128xf32>
    %cst_39 = arith.constant 1.000000e+00 : f32
    %139 = vector.broadcast %cst_39 : f32 to vector<8x128xf32>
    %140 = arith.subf %139, %135 : vector<8x128xf32>
    %141 = arith.mulf %140, %138 : vector<8x128xf32>
    %142 = arith.mulf %135, %107 : vector<8x128xf32>
    %143 = arith.addf %141, %142 : vector<8x128xf32>
    %144 = arith.index_cast %c3_i32 : i32 to index
    %c0_40 = arith.constant 0 : index
    %c0_41 = arith.constant 0 : index
    %145 = vector.load %arg4[%144, %c0_40, %c0_41] : memref<8x8x128xf32, #tpu.memory_space<vmem>>, vector<1x8x128xf32>
    %146 = vector.shape_cast %145 : vector<1x8x128xf32> to vector<8x128xf32>
    %147 = vector.shape_cast %143 : vector<8x128xf32> to vector<1x8x128xf32>
    tpu.vector_store %arg4[%144, %c0_40, %c0_41], %147 {strides = array<i32>} : memref<8x8x128xf32, #tpu.memory_space<vmem>>, vector<1x8x128xf32>,
    %c4_i32 = arith.constant 4 : i32
    %148 = arith.index_cast %c4_i32 : i32 to index
    %c0_42 = arith.constant 0 : index
    %c0_43 = arith.constant 0 : index
    %149 = vector.load %arg0[%148, %c0_42, %c0_43] : memref<8x8x384xf32, #tpu.memory_space<vmem>>, vector<1x8x384xf32>
    %150 = vector.shape_cast %149 : vector<1x8x384xf32> to vector<8x384xf32>
    %c0_44 = arith.constant 0 : index
    %c0_45 = arith.constant 0 : index
    %151 = vector.load %arg1[%c0_44, %c0_45] : memref<128x384xf32, #tpu.memory_space<vmem>>, vector<128x384xf32>
    %cst_46 = arith.constant dense<0.000000e+00> : vector<8x384xf32>
    %152 = tpu.matmul %143, %151, %cst_46 {dimension_numbers = #tpu.dot_dimension_numbers<[1], [0], [0], [1], [0, 0, 1, 1], [], []>} : vector<8x128xf32>, vector<128x384xf32>, vector<8x384xf32> -> vector<8x384xf32>
    %153 = arith.addf %152, %2 : vector<8x384xf32>
    %154 = vector.extract_strided_slice %150 {offsets = [0, 0], sizes = [8, 128], strides = [1, 1]} : vector<8x384xf32> to vector<8x128xf32>
    %155 = vector.extract_strided_slice %150 {offsets = [0, 128], sizes = [8, 128], strides = [1, 1]} : vector<8x384xf32> to vector<8x128xf32>
    %156 = vector.extract_strided_slice %150 {offsets = [0, 256], sizes = [8, 128], strides = [1, 1]} : vector<8x384xf32> to vector<8x128xf32>
    %157 = vector.extract_strided_slice %153 {offsets = [0, 0], sizes = [8, 128], strides = [1, 1]} : vector<8x384xf32> to vector<8x128xf32>
    %158 = vector.extract_strided_slice %153 {offsets = [0, 128], sizes = [8, 128], strides = [1, 1]} : vector<8x384xf32> to vector<8x128xf32>
    %159 = vector.extract_strided_slice %153 {offsets = [0, 256], sizes = [8, 128], strides = [1, 1]} : vector<8x384xf32> to vector<8x128xf32>
    %160 = arith.addf %154, %157 : vector<8x128xf32>
    %161 = arith.negf %160 : vector<8x128xf32>
    %162 = math.exp %161 : vector<8x128xf32>
    %cst_47 = arith.constant 1.000000e+00 : f32
    %163 = vector.broadcast %cst_47 : f32 to vector<8x128xf32>
    %164 = arith.addf %163, %162 : vector<8x128xf32>
    %165 = arith.divf %163, %164 : vector<8x128xf32>
    %166 = arith.addf %155, %158 : vector<8x128xf32>
    %167 = arith.negf %166 : vector<8x128xf32>
    %168 = math.exp %167 : vector<8x128xf32>
    %cst_48 = arith.constant 1.000000e+00 : f32
    %169 = vector.broadcast %cst_48 : f32 to vector<8x128xf32>
    %170 = arith.addf %169, %168 : vector<8x128xf32>
    %171 = arith.divf %169, %170 : vector<8x128xf32>
    %172 = arith.mulf %165, %159 : vector<8x128xf32>
    %173 = arith.addf %156, %172 : vector<8x128xf32>
    %174 = math.tanh %173 : vector<8x128xf32>
    %cst_49 = arith.constant 1.000000e+00 : f32
    %175 = vector.broadcast %cst_49 : f32 to vector<8x128xf32>
    %176 = arith.subf %175, %171 : vector<8x128xf32>
    %177 = arith.mulf %176, %174 : vector<8x128xf32>
    %178 = arith.mulf %171, %143 : vector<8x128xf32>
    %179 = arith.addf %177, %178 : vector<8x128xf32>
    %180 = arith.index_cast %c4_i32 : i32 to index
    %c0_50 = arith.constant 0 : index
    %c0_51 = arith.constant 0 : index
    %181 = vector.load %arg4[%180, %c0_50, %c0_51] : memref<8x8x128xf32, #tpu.memory_space<vmem>>, vector<1x8x128xf32>
    %182 = vector.shape_cast %181 : vector<1x8x128xf32> to vector<8x128xf32>
    %183 = vector.shape_cast %179 : vector<8x128xf32> to vector<1x8x128xf32>
    tpu.vector_store %arg4[%180, %c0_50, %c0_51], %183 {strides = array<i32>} : memref<8x8x128xf32, #tpu.memory_space<vmem>>, vector<1x8x128xf32>,
    %c5_i32 = arith.constant 5 : i32
    %184 = arith.index_cast %c5_i32 : i32 to index
    %c0_52 = arith.constant 0 : index
    %c0_53 = arith.constant 0 : index
    %185 = vector.load %arg0[%184, %c0_52, %c0_53] : memref<8x8x384xf32, #tpu.memory_space<vmem>>, vector<1x8x384xf32>
    %186 = vector.shape_cast %185 : vector<1x8x384xf32> to vector<8x384xf32>
    %c0_54 = arith.constant 0 : index
    %c0_55 = arith.constant 0 : index
    %187 = vector.load %arg1[%c0_54, %c0_55] : memref<128x384xf32, #tpu.memory_space<vmem>>, vector<128x384xf32>
    %cst_56 = arith.constant dense<0.000000e+00> : vector<8x384xf32>
    %188 = tpu.matmul %179, %187, %cst_56 {dimension_numbers = #tpu.dot_dimension_numbers<[1], [0], [0], [1], [0, 0, 1, 1], [], []>} : vector<8x128xf32>, vector<128x384xf32>, vector<8x384xf32> -> vector<8x384xf32>
    %189 = arith.addf %188, %2 : vector<8x384xf32>
    %190 = vector.extract_strided_slice %186 {offsets = [0, 0], sizes = [8, 128], strides = [1, 1]} : vector<8x384xf32> to vector<8x128xf32>
    %191 = vector.extract_strided_slice %186 {offsets = [0, 128], sizes = [8, 128], strides = [1, 1]} : vector<8x384xf32> to vector<8x128xf32>
    %192 = vector.extract_strided_slice %186 {offsets = [0, 256], sizes = [8, 128], strides = [1, 1]} : vector<8x384xf32> to vector<8x128xf32>
    %193 = vector.extract_strided_slice %189 {offsets = [0, 0], sizes = [8, 128], strides = [1, 1]} : vector<8x384xf32> to vector<8x128xf32>
    %194 = vector.extract_strided_slice %189 {offsets = [0, 128], sizes = [8, 128], strides = [1, 1]} : vector<8x384xf32> to vector<8x128xf32>
    %195 = vector.extract_strided_slice %189 {offsets = [0, 256], sizes = [8, 128], strides = [1, 1]} : vector<8x384xf32> to vector<8x128xf32>
    %196 = arith.addf %190, %193 : vector<8x128xf32>
    %197 = arith.negf %196 : vector<8x128xf32>
    %198 = math.exp %197 : vector<8x128xf32>
    %cst_57 = arith.constant 1.000000e+00 : f32
    %199 = vector.broadcast %cst_57 : f32 to vector<8x128xf32>
    %200 = arith.addf %199, %198 : vector<8x128xf32>
    %201 = arith.divf %199, %200 : vector<8x128xf32>
    %202 = arith.addf %191, %194 : vector<8x128xf32>
    %203 = arith.negf %202 : vector<8x128xf32>
    %204 = math.exp %203 : vector<8x128xf32>
    %cst_58 = arith.constant 1.000000e+00 : f32
    %205 = vector.broadcast %cst_58 : f32 to vector<8x128xf32>
    %206 = arith.addf %205, %204 : vector<8x128xf32>
    %207 = arith.divf %205, %206 : vector<8x128xf32>
    %208 = arith.mulf %201, %195 : vector<8x128xf32>
    %209 = arith.addf %192, %208 : vector<8x128xf32>
    %210 = math.tanh %209 : vector<8x128xf32>
    %cst_59 = arith.constant 1.000000e+00 : f32
    %211 = vector.broadcast %cst_59 : f32 to vector<8x128xf32>
    %212 = arith.subf %211, %207 : vector<8x128xf32>
    %213 = arith.mulf %212, %210 : vector<8x128xf32>
    %214 = arith.mulf %207, %179 : vector<8x128xf32>
    %215 = arith.addf %213, %214 : vector<8x128xf32>
    %216 = arith.index_cast %c5_i32 : i32 to index
    %c0_60 = arith.constant 0 : index
    %c0_61 = arith.constant 0 : index
    %217 = vector.load %arg4[%216, %c0_60, %c0_61] : memref<8x8x128xf32, #tpu.memory_space<vmem>>, vector<1x8x128xf32>
    %218 = vector.shape_cast %217 : vector<1x8x128xf32> to vector<8x128xf32>
    %219 = vector.shape_cast %215 : vector<8x128xf32> to vector<1x8x128xf32>
    tpu.vector_store %arg4[%216, %c0_60, %c0_61], %219 {strides = array<i32>} : memref<8x8x128xf32, #tpu.memory_space<vmem>>, vector<1x8x128xf32>,
    %c6_i32 = arith.constant 6 : i32
    %220 = arith.index_cast %c6_i32 : i32 to index
    %c0_62 = arith.constant 0 : index
    %c0_63 = arith.constant 0 : index
    %221 = vector.load %arg0[%220, %c0_62, %c0_63] : memref<8x8x384xf32, #tpu.memory_space<vmem>>, vector<1x8x384xf32>
    %222 = vector.shape_cast %221 : vector<1x8x384xf32> to vector<8x384xf32>
    %c0_64 = arith.constant 0 : index
    %c0_65 = arith.constant 0 : index
    %223 = vector.load %arg1[%c0_64, %c0_65] : memref<128x384xf32, #tpu.memory_space<vmem>>, vector<128x384xf32>
    %cst_66 = arith.constant dense<0.000000e+00> : vector<8x384xf32>
    %224 = tpu.matmul %215, %223, %cst_66 {dimension_numbers = #tpu.dot_dimension_numbers<[1], [0], [0], [1], [0, 0, 1, 1], [], []>} : vector<8x128xf32>, vector<128x384xf32>, vector<8x384xf32> -> vector<8x384xf32>
    %225 = arith.addf %224, %2 : vector<8x384xf32>
    %226 = vector.extract_strided_slice %222 {offsets = [0, 0], sizes = [8, 128], strides = [1, 1]} : vector<8x384xf32> to vector<8x128xf32>
    %227 = vector.extract_strided_slice %222 {offsets = [0, 128], sizes = [8, 128], strides = [1, 1]} : vector<8x384xf32> to vector<8x128xf32>
    %228 = vector.extract_strided_slice %222 {offsets = [0, 256], sizes = [8, 128], strides = [1, 1]} : vector<8x384xf32> to vector<8x128xf32>
    %229 = vector.extract_strided_slice %225 {offsets = [0, 0], sizes = [8, 128], strides = [1, 1]} : vector<8x384xf32> to vector<8x128xf32>
    %230 = vector.extract_strided_slice %225 {offsets = [0, 128], sizes = [8, 128], strides = [1, 1]} : vector<8x384xf32> to vector<8x128xf32>
    %231 = vector.extract_strided_slice %225 {offsets = [0, 256], sizes = [8, 128], strides = [1, 1]} : vector<8x384xf32> to vector<8x128xf32>
    %232 = arith.addf %226, %229 : vector<8x128xf32>
    %233 = arith.negf %232 : vector<8x128xf32>
    %234 = math.exp %233 : vector<8x128xf32>
    %cst_67 = arith.constant 1.000000e+00 : f32
    %235 = vector.broadcast %cst_67 : f32 to vector<8x128xf32>
    %236 = arith.addf %235, %234 : vector<8x128xf32>
    %237 = arith.divf %235, %236 : vector<8x128xf32>
    %238 = arith.addf %227, %230 : vector<8x128xf32>
    %239 = arith.negf %238 : vector<8x128xf32>
    %240 = math.exp %239 : vector<8x128xf32>
    %cst_68 = arith.constant 1.000000e+00 : f32
    %241 = vector.broadcast %cst_68 : f32 to vector<8x128xf32>
    %242 = arith.addf %241, %240 : vector<8x128xf32>
    %243 = arith.divf %241, %242 : vector<8x128xf32>
    %244 = arith.mulf %237, %231 : vector<8x128xf32>
    %245 = arith.addf %228, %244 : vector<8x128xf32>
    %246 = math.tanh %245 : vector<8x128xf32>
    %cst_69 = arith.constant 1.000000e+00 : f32
    %247 = vector.broadcast %cst_69 : f32 to vector<8x128xf32>
    %248 = arith.subf %247, %243 : vector<8x128xf32>
    %249 = arith.mulf %248, %246 : vector<8x128xf32>
    %250 = arith.mulf %243, %215 : vector<8x128xf32>
    %251 = arith.addf %249, %250 : vector<8x128xf32>
    %252 = arith.index_cast %c6_i32 : i32 to index
    %c0_70 = arith.constant 0 : index
    %c0_71 = arith.constant 0 : index
    %253 = vector.load %arg4[%252, %c0_70, %c0_71] : memref<8x8x128xf32, #tpu.memory_space<vmem>>, vector<1x8x128xf32>
    %254 = vector.shape_cast %253 : vector<1x8x128xf32> to vector<8x128xf32>
    %255 = vector.shape_cast %251 : vector<8x128xf32> to vector<1x8x128xf32>
    tpu.vector_store %arg4[%252, %c0_70, %c0_71], %255 {strides = array<i32>} : memref<8x8x128xf32, #tpu.memory_space<vmem>>, vector<1x8x128xf32>,
    %c7_i32 = arith.constant 7 : i32
    %256 = arith.index_cast %c7_i32 : i32 to index
    %c0_72 = arith.constant 0 : index
    %c0_73 = arith.constant 0 : index
    %257 = vector.load %arg0[%256, %c0_72, %c0_73] : memref<8x8x384xf32, #tpu.memory_space<vmem>>, vector<1x8x384xf32>
    %258 = vector.shape_cast %257 : vector<1x8x384xf32> to vector<8x384xf32>
    %c0_74 = arith.constant 0 : index
    %c0_75 = arith.constant 0 : index
    %259 = vector.load %arg1[%c0_74, %c0_75] : memref<128x384xf32, #tpu.memory_space<vmem>>, vector<128x384xf32>
    %cst_76 = arith.constant dense<0.000000e+00> : vector<8x384xf32>
    %260 = tpu.matmul %251, %259, %cst_76 {dimension_numbers = #tpu.dot_dimension_numbers<[1], [0], [0], [1], [0, 0, 1, 1], [], []>} : vector<8x128xf32>, vector<128x384xf32>, vector<8x384xf32> -> vector<8x384xf32>
    %261 = arith.addf %260, %2 : vector<8x384xf32>
    %262 = vector.extract_strided_slice %258 {offsets = [0, 0], sizes = [8, 128], strides = [1, 1]} : vector<8x384xf32> to vector<8x128xf32>
    %263 = vector.extract_strided_slice %258 {offsets = [0, 128], sizes = [8, 128], strides = [1, 1]} : vector<8x384xf32> to vector<8x128xf32>
    %264 = vector.extract_strided_slice %258 {offsets = [0, 256], sizes = [8, 128], strides = [1, 1]} : vector<8x384xf32> to vector<8x128xf32>
    %265 = vector.extract_strided_slice %261 {offsets = [0, 0], sizes = [8, 128], strides = [1, 1]} : vector<8x384xf32> to vector<8x128xf32>
    %266 = vector.extract_strided_slice %261 {offsets = [0, 128], sizes = [8, 128], strides = [1, 1]} : vector<8x384xf32> to vector<8x128xf32>
    %267 = vector.extract_strided_slice %261 {offsets = [0, 256], sizes = [8, 128], strides = [1, 1]} : vector<8x384xf32> to vector<8x128xf32>
    %268 = arith.addf %262, %265 : vector<8x128xf32>
    %269 = arith.negf %268 : vector<8x128xf32>
    %270 = math.exp %269 : vector<8x128xf32>
    %cst_77 = arith.constant 1.000000e+00 : f32
    %271 = vector.broadcast %cst_77 : f32 to vector<8x128xf32>
    %272 = arith.addf %271, %270 : vector<8x128xf32>
    %273 = arith.divf %271, %272 : vector<8x128xf32>
    %274 = arith.addf %263, %266 : vector<8x128xf32>
    %275 = arith.negf %274 : vector<8x128xf32>
    %276 = math.exp %275 : vector<8x128xf32>
    %cst_78 = arith.constant 1.000000e+00 : f32
    %277 = vector.broadcast %cst_78 : f32 to vector<8x128xf32>
    %278 = arith.addf %277, %276 : vector<8x128xf32>
    %279 = arith.divf %277, %278 : vector<8x128xf32>
    %280 = arith.mulf %273, %267 : vector<8x128xf32>
    %281 = arith.addf %264, %280 : vector<8x128xf32>
    %282 = math.tanh %281 : vector<8x128xf32>
    %cst_79 = arith.constant 1.000000e+00 : f32
    %283 = vector.broadcast %cst_79 : f32 to vector<8x128xf32>
    %284 = arith.subf %283, %279 : vector<8x128xf32>
    %285 = arith.mulf %284, %282 : vector<8x128xf32>
    %286 = arith.mulf %279, %251 : vector<8x128xf32>
    %287 = arith.addf %285, %286 : vector<8x128xf32>
    %288 = arith.index_cast %c7_i32 : i32 to index
    %c0_80 = arith.constant 0 : index
    %c0_81 = arith.constant 0 : index
    %289 = vector.load %arg4[%288, %c0_80, %c0_81] : memref<8x8x128xf32, #tpu.memory_space<vmem>>, vector<1x8x128xf32>
    %290 = vector.shape_cast %289 : vector<1x8x128xf32> to vector<8x128xf32>
    %291 = vector.shape_cast %287 : vector<8x128xf32> to vector<1x8x128xf32>
    tpu.vector_store %arg4[%288, %c0_80, %c0_81], %291 {strides = array<i32>} : memref<8x8x128xf32, #tpu.memory_space<vmem>>, vector<1x8x128xf32>,
    %c8_i32 = arith.constant 8 : i32
    return
  }
}

module attributes {stable_mosaic.version = 11 : i64} {
  func.func @_matmul_bias_kernel(%arg0: memref<8x128xf32, #tpu.memory_space<vmem>>, %arg1: memref<128x128xf32, #tpu.memory_space<vmem>>, %arg2: memref<1x128xf32, #tpu.memory_space<vmem>>, %arg3: memref<8x128xf32, #tpu.memory_space<vmem>>) attributes {dimension_semantics = [], scalar_prefetch = 0 : i64, scratch_operands = 0 : i64, tpu.core_type = #tpu.core_type<tc>} {
    %c0 = arith.constant 0 : index
    %c0_0 = arith.constant 0 : index
    %0 = vector.load %arg0[%c0, %c0_0] : memref<8x128xf32, #tpu.memory_space<vmem>>, vector<8x128xf32>
    %c0_1 = arith.constant 0 : index
    %c0_2 = arith.constant 0 : index
    %1 = vector.load %arg1[%c0_1, %c0_2] : memref<128x128xf32, #tpu.memory_space<vmem>>, vector<128x128xf32>
    %cst = arith.constant dense<0.000000e+00> : vector<8x128xf32>
    %2 = tpu.matmul %0, %1, %cst {dimension_numbers = #tpu.dot_dimension_numbers<[1], [0], [0], [1], [0, 0, 1, 1], [], []>} : vector<8x128xf32>, vector<128x128xf32>, vector<8x128xf32> -> vector<8x128xf32>
    %c0_3 = arith.constant 0 : index
    %c0_4 = arith.constant 0 : index
    %3 = vector.load %arg2[%c0_3, %c0_4] : memref<1x128xf32, #tpu.memory_space<vmem>>, vector<1x128xf32>
    %4 = vector.broadcast %3 : vector<1x128xf32> to vector<8x128xf32>
    %5 = arith.addf %2, %4 : vector<8x128xf32>
    %c0_5 = arith.constant 0 : index
    %c0_6 = arith.constant 0 : index
    %6 = vector.load %arg3[%c0_5, %c0_6] : memref<8x128xf32, #tpu.memory_space<vmem>>, vector<8x128xf32>
    tpu.vector_store %arg3[%c0_5, %c0_6], %5 {strides = array<i32>} : memref<8x128xf32, #tpu.memory_space<vmem>>, vector<8x128xf32>,
    return
  }
}

</mosaic_0001>

<bundles_post_ra>
// kernel: _lambda_.5
= control target key start
LH: loop header
LB: loop body
LE: loop exit
PB: predicated region body
PF: predicated region fallthrough
CT: control target
= control target key end

     0   :  { %s138_s1 = inlined_call_operand.vmem [shape: f32[128,128], index: 1, kind: input, shape index: {}]   ;;  %s139_s2 = inlined_call_operand.vmem [shape: f32[1,128], index: 2, kind: input, shape index: {}]   ;;  %s140_s0 = inlined_call_operand.vmem [shape: f32[8,128], index: 0, kind: input, shape index: {}]   ;;  %s141_s3 = inlined_call_operand.vmem [shape: f32[8,128], index: 3, kind: output, shape index: {}]  }
   0x1   :  { %v30_v0 = vld [vmem:[%s138_s1 + $0x78] sm:$0xff]  ;;  %v29_v1 = vld [vmem:[%s138_s1 + $0x70] sm:$0xff]  ;;  %v28_v2 = vld [vmem:[%s138_s1 + $0x68] sm:$0xff] }
   0x2   :  { %35 = vmatpush.msra.mxu0 %v30_v0  ;;  %v27_v3 = vld [vmem:[%s138_s1 + $0x60] sm:$0xff]  ;;  %v26_v4 = vld [vmem:[%s138_s1 + $0x58] sm:$0xff]  ;;  %v25_v5 = vld [vmem:[%s138_s1 + $0x50] sm:$0xff] }
   0x3   :  { %v24_v6 = vld [vmem:[%s138_s1 + $0x48] sm:$0xff]  ;;  %v23_v7 = vld [vmem:[%s138_s1 + $0x40] sm:$0xff]  ;;  %v22_v8 = vld [vmem:[%s138_s1 + $0x38] sm:$0xff] }
   0x4   :  { %36 = vmatpush.msra.mxu0 %v29_v1  ;;  %v21_v9 = vld [vmem:[%s138_s1 + $0x30] sm:$0xff]  ;;  %v20_v10 = vld [vmem:[%s138_s1 + $0x28] sm:$0xff]  ;;  %v19_v11 = vld [vmem:[%s138_s1 + $0x20] sm:$0xff] }
   0x5   :  { %v18_v12 = vld [vmem:[%s138_s1 + $0x18] sm:$0xff]  ;;  %v17_v13 = vld [vmem:[%s138_s1 + $0x10] sm:$0xff]  ;;  %v16_v14 = vld [vmem:[%s138_s1 + $0x8] sm:$0xff] }
   0x6   :  { %37 = vmatpush.msra.mxu0 %v28_v2  ;;  %v15_v15 = vld [vmem:[%s138_s1] sm:$0xff] }
   0x7   :  { %v14_v16 = vld [vmem:[%s140_s0] sm:$0xff] }
   0x8   :  { %38 = vmatpush.msra.mxu0 %v27_v3  ;;  %v60_v17 = vld [vmem:[%s139_s2] ss:$0 sm:$0xff] }
   0xa   :  { %39 = vmatpush.msra.mxu0 %v26_v4 }
   0xc   :  { %40 = vmatpush.msra.mxu0 %v25_v5 }
   0xe   :  { %41 = vmatpush.msra.mxu0 %v24_v6 }
  0x10   :  { %42 = vmatpush.msra.mxu0 %v23_v7 }
  0x12   :  { %43 = vmatpush.msra.mxu0 %v22_v8 }
  0x14   :  { %44 = vmatpush.msra.mxu0 %v21_v9 }
  0x16   :  { %45 = vmatpush.msra.mxu0 %v20_v10 }
  0x18   :  { %46 = vmatpush.msra.mxu0 %v19_v11 }
  0x1a   :  { %47 = vmatpush.msra.mxu0 %v18_v12 }
  0x1c   :  { %48 = vmatpush.msra.mxu0 %v17_v13 }
  0x1e   :  { %49 = vmatpush.msra.mxu0 %v16_v14 }
  0x20   :  { %50 = vmatpush.msra.mxu0 %v15_v15 }
  0x21   :  { %51 = vmatmul.f32.vlgmr.msra.gmra.mxu0 %v14_v16 }
  0x9e   :  { %v52_v18 = vpop.f32.mrf.mxu0 }
  0x9f   :  { %v53_v19 = vadd.f32 %v60_v17, %v52_v18 }
  0xa1   :  { %55 = vst [vmem:[%s141_s3] sm:$0xff] %v53_v19 }

// kernel: _lambda_.3
= control target key start
LH: loop header
LB: loop body
LE: loop exit
PB: predicated region body
PF: predicated region fallthrough
CT: control target
= control target key end

     0   :  { %vm110_vm0 = vcmask 523264   ;;  %s972_s1 = inlined_call_operand.vmem [shape: f32[192,384], index: 1, kind: input, shape index: {}]   ;;  %s973_s0 = inlined_call_operand.vmem [shape: f32[64,192], index: 0, kind: input, shape index: {}]   ;;  %s974_s2 = inlined_call_operand.vmem [shape: f32[1,384], index: 2, kind: input, shape index: {}]   ;;  %s975_s3 = inlined_call_operand.vmem [shape: f32[64,384], index: 3, kind: output, shape index: {}]  }
   0x1   :  { %v75_v0 = vld [vmem:[%s972_s1 + $0x168] sm:$0xff]  ;;  %v76_v1 = vld [vmem:[%s972_s1 + $0x170] sm:$0xff]  ;;  %v73_v4 = vld [vmem:[%s972_s1 + $0x158] sm:$0xff] }
   0x2   :  { %v478_v2 = vld [vmem:[%s972_s1 + $0x230] sm:$0xff]  ;;  %135 = vmatpush.msra.mxu0 %v75_v0  ;;  %217 = vmatpush.msra.mxu2 %v76_v1  ;;  %v489_v5 = vld [vmem:[%s972_s1 + $0x218] sm:$0xff]  ;;  %v498_v7 = vld [vmem:[%s972_s1 + $0x228] sm:$0xff] }
   0x3   :  { %v72_v3 = vld [vmem:[%s972_s1 + $0x150] sm:$0xff]  ;;  %441 = vmatpush.msra.mxu3 %v478_v2  ;;  %v69_v6 = vld [vmem:[%s972_s1 + $0x138] sm:$0xff]  ;;  %v70_v8 = vld [vmem:[%s972_s1 + $0x140] sm:$0xff]  ;;  %433 = vmatpush.msra.mxu1 %v498_v7 }
   0x4   :  { %136 = vmatpush.msra.mxu0 %v72_v3  ;;  %218 = vmatpush.msra.mxu2 %v73_v4  ;;  %v506_v9 = vld [vmem:[%s972_s1 + $0x200] sm:$0xff]  ;;  %v511_v10 = vld [vmem:[%s972_s1 + $0x210] sm:$0xff]  ;;  %v67_v12 = vld [vmem:[%s972_s1 + $0x128] sm:$0xff] }
   0x5   :  { %442 = vmatpush.msra.mxu3 %v489_v5  ;;  %v66_v11 = vld [vmem:[%s972_s1 + $0x120] sm:$0xff]  ;;  %v524_v13 = vld [vmem:[%s972_s1 + $0x1e8] sm:$0xff]  ;;  %v529_v14 = vld [vmem:[%s972_s1 + $0x1f8] sm:$0xff]  ;;  %434 = vmatpush.msra.mxu1 %v511_v10 }
   0x6   :  { %137 = vmatpush.msra.mxu0 %v69_v6  ;;  %219 = vmatpush.msra.mxu2 %v70_v8  ;;  %v63_v15 = vld [vmem:[%s972_s1 + $0x108] sm:$0xff]  ;;  %v64_v16 = vld [vmem:[%s972_s1 + $0x110] sm:$0xff]  ;;  %v547_v18 = vld [vmem:[%s972_s1 + $0x1e0] sm:$0xff] }
   0x7   :  { %443 = vmatpush.msra.mxu3 %v506_v9  ;;  %v542_v17 = vld [vmem:[%s972_s1 + $0x1d0] sm:$0xff]  ;;  %435 = vmatpush.msra.mxu1 %v529_v14  ;;  %v61_v20 = vld [vmem:[%s972_s1 + $0xf8] sm:$0xff]  ;;  %v565_v22 = vld [vmem:[%s972_s1 + $0x1c8] sm:$0xff] }
   0x8   :  { %138 = vmatpush.msra.mxu0 %v66_v11  ;;  %220 = vmatpush.msra.mxu2 %v67_v12  ;;  %v60_v19 = vld [vmem:[%s972_s1 + $0xf0] sm:$0xff]  ;;  %v560_v21 = vld [vmem:[%s972_s1 + $0x1b8] sm:$0xff]  ;;  %v58_v24 = vld [vmem:[%s972_s1 + $0xe0] sm:$0xff] }
   0x9   :  { %444 = vmatpush.msra.mxu3 %v524_v13  ;;  %436 = vmatpush.msra.mxu1 %v547_v18  ;;  %v57_v23 = vld [vmem:[%s972_s1 + $0xd8] sm:$0xff]  ;;  %v578_v25 = vld [vmem:[%s972_s1 + $0x1a0] sm:$0xff]  ;;  %v583_v26 = vld [vmem:[%s972_s1 + $0x1b0] sm:$0xff] }
   0xa   :  { %139 = vmatpush.msra.mxu0 %v63_v15  ;;  %221 = vmatpush.msra.mxu2 %v64_v16  ;;  %v54_v27 = vld [vmem:[%s972_s1 + $0xc0] sm:$0xff]  ;;  %v55_v28 = vld [vmem:[%s972_s1 + $0xc8] sm:$0xff]  ;;  %v601_v30 = vld [vmem:[%s972_s1 + $0x198] sm:$0xff] }
   0xb   :  { %445 = vmatpush.msra.mxu3 %v542_v17  ;;  %437 = vmatpush.msra.mxu1 %v565_v22  ;;  %v596_v29 = vld [vmem:[%s972_s1 + $0x188] sm:$0xff]  ;;  %v608_v31 = vld [vmem:[%s973_s0 + $0x38] sm:$0xff]  ;;  %v52_v34 = vld [vmem:[%s972_s1 + $0xb0] sm:$0xff] }
   0xc   :  { %140 = vmatpush.msra.mxu0 %v60_v19  ;;  %222 = vmatpush.msra.mxu2 %v61_v20  ;;  %v51_v32 = vld [vmem:[%s972_s1 + $0xa8] sm:$0xff]  ;;  %v101_v33 = vld [vmem:[%s972_s1 + $0x238] sm:$0xff]  ;;  %v48_v35 = vld [vmem:[%s972_s1 + $0x90] sm:$0xff] }
   0xd   :  { %446 = vmatpush.msra.mxu3 %v560_v21  ;;  %438 = vmatpush.msra.mxu1 %v583_v26  ;;  %v627_v36 = vld [vmem:[%s972_s1 + $0x180] sm:$0xff]  ;;  %v49_v37 = vld [vmem:[%s972_s1 + $0x98] sm:$0xff]  ;;  %v43_v44 = vld [vmem:[%s972_s1 + $0x68] sm:$0xff] }
   0xe   :  { %141 = vmatpush.msra.mxu0 %v57_v23  ;;  %223 = vmatpush.msra.mxu2 %v58_v24  ;;  %v77_v38 = vld [vmem:[%s972_s1 + $0x178] sm:$0xff]  ;;  %v46_v40 = vld [vmem:[%s972_s1 + $0x80] sm:$0xff]  ;;  %v95_v45 = vld [vmem:[%s972_s1 + $0x208] sm:$0xff] }
   0xf   :  { %447 = vmatpush.msra.mxu3 %v578_v25  ;;  %439 = vmatpush.msra.mxu1 %v601_v30  ;;  %v45_v39 = vld [vmem:[%s972_s1 + $0x78] sm:$0xff]  ;;  %v98_v41 = vld [vmem:[%s972_s1 + $0x220] sm:$0xff]  ;;  %v664_v46 = vld [vmem:[%s973_s0 + $0x48] sm:$0xff] }
  0x10   :  { %142 = vmatpush.msra.mxu0 %v54_v27  ;;  %224 = vmatpush.msra.mxu2 %v55_v28  ;;  %v42_v42 = vld [vmem:[%s972_s1 + $0x60] sm:$0xff]  ;;  %v39_v47 = vld [vmem:[%s972_s1 + $0x48] sm:$0xff]  ;;  %v40_v48 = vld [vmem:[%s972_s1 + $0x50] sm:$0xff] }
  0x11   :  { %448 = vmatpush.msra.mxu3 %v596_v29  ;;  %440 = vmatpush.msra.mxu1 %v627_v36  ;;  %v74_v43 = vld [vmem:[%s972_s1 + $0x160] sm:$0xff]  ;;  %v71_v49 = vld [vmem:[%s972_s1 + $0x148] sm:$0xff]  ;;  %v36_v50 = vld [vmem:[%s972_s1 + $0x30] sm:$0xff] }
  0x12   :  { %420 = vmatmul.msk.f32.vlgmr.msra.gmra.mxu3 %vm110_vm0, %v608_v31  ;;  %143 = vmatpush.msra.mxu0 %v51_v32  ;;  %v92_v51 = vld [vmem:[%s972_s1 + $0x1f0] sm:$0xff]  ;;  %v37_v52 = vld [vmem:[%s972_s1 + $0x38] sm:$0xff]  ;;  %v34_v55 = vld [vmem:[%s972_s1 + $0x20] sm:$0xff] }
  0x13   :  { %348 = vmatpush.msrb.mxu3 %v101_v33  ;;  %225 = vmatpush.msra.mxu2 %v52_v34  ;;  %v68_v53 = vld [vmem:[%s972_s1 + $0x130] sm:$0xff]  ;;  %v33_v54 = vld [vmem:[%s972_s1 + $0x18] sm:$0xff]  ;;  %v30_v58 = vld [vmem:[%s972_s1] sm:$0xff] }
  0x14   :  { %144 = vmatpush.msra.mxu0 %v48_v35  ;;  %412 = vmatmul.msk.f32.vlgmr.msra.gmra.mxu1 %vm110_vm0, %v608_v31  ;;  %v89_v56 = vld [vmem:[%s972_s1 + $0x1d8] sm:$0xff]  ;;  %v31_v59 = vld [vmem:[%s972_s1 + $0x8] sm:$0xff]  ;;  %v712_v60 = vld [vmem:[%s973_s0] sm:$0xff] }
  0x15   :  { %226 = vmatpush.msra.mxu2 %v49_v37  ;;  %299 = vmatpush.msrb.mxu1 %v77_v38  ;;  %v65_v57 = vld [vmem:[%s972_s1 + $0x118] sm:$0xff]  ;;  %v62_v62 = vld [vmem:[%s972_s1 + $0x100] sm:$0xff]  ;;  %v59_v0 = vld [vmem:[%s972_s1 + $0xe8] sm:$0xff] }
  0x16   :  { %145 = vmatpush.msra.mxu0 %v45_v39  ;;  %349 = vmatpush.msrb.mxu3 %v98_v41  ;;  %v717_v61 = vld [vmem:[%s973_s0 + $0x58] sm:$0xff]  ;;  %v86_v63 = vld [vmem:[%s972_s1 + $0x1c0] sm:$0xff]  ;;  %v56_v1 = vld [vmem:[%s972_s1 + $0xd0] sm:$0xff] }
  0x17   :  { %227 = vmatpush.msra.mxu2 %v46_v40  ;;  %300 = vmatpush.msrb.mxu1 %v74_v43  ;;  %v83_v3 = vld [vmem:[%s972_s1 + $0x1a8] sm:$0xff]  ;;  %v53_v4 = vld [vmem:[%s972_s1 + $0xb8] sm:$0xff]  ;;  %v32_v15 = vld [vmem:[%s972_s1 + $0x10] sm:$0xff] }
  0x18   :  { %146 = vmatpush.msra.mxu0 %v42_v42  ;;  %350 = vmatpush.msrb.mxu3 %v95_v45  ;;  %v753_v6 = vld [vmem:[%s973_s0 + $0x68] sm:$0xff]  ;;  %v41_v11 = vld [vmem:[%s972_s1 + $0x58] sm:$0xff]  ;;  %v20_v16 = vld [vmem:[%s973_s0 + $0x30] sm:$0xff] }
  0x19   :  { %228 = vmatpush.msra.mxu2 %v43_v44  ;;  %301 = vmatpush.msrb.mxu1 %v71_v49  ;;  %v47_v8 = vld [vmem:[%s972_s1 + $0x88] sm:$0xff]  ;;  %v29_v12 = vld [vmem:[%s973_s0 + $0x78] sm:$0xff]  ;;  %v24_v20 = vld [vmem:[%s973_s0 + $0x50] sm:$0xff] }
  0x1a   :  { %421 = vmatmul.msk.f32.gmra.mxu3 %vm110_vm0, %v664_v46  ;;  %147 = vmatpush.msra.mxu0 %v39_v47  ;;  %v17_v19 = vld [vmem:[%s973_s0 + $0x18] sm:$0xff]  ;;  %v28_v23 = vld [vmem:[%s973_s0 + $0x70] sm:$0xff]  ;;  %v102_v37 = vld [vmem:[%s974_s2] sm:$0x7] }
  0x1b   :  { %229 = vmatpush.msra.mxu2 %v40_v48  ;;  %351 = vmatpush.msrb.mxu3 %v92_v51  ;;  %v859_v39 = vperm.slane %v102_v37, 0  ;;  %v866_v44 = vperm.slane %v102_v37, 2  ;;  %v871_v47 = vperm.slane %v102_v37, 1 }
  0x1c   :  { %148 = vmatpush.msra.mxu0 %v36_v50  ;;  %413 = vmatmul.msk.f32.gmra.mxu1 %vm110_vm0, %v664_v46 }
  0x1d   :  { %230 = vmatpush.msra.mxu2 %v37_v52  ;;  %302 = vmatpush.msrb.mxu1 %v68_v53 }
  0x1e   :  { %149 = vmatpush.msra.mxu0 %v33_v54  ;;  %352 = vmatpush.msrb.mxu3 %v89_v56 }
  0x1f   :  { %231 = vmatpush.msra.mxu2 %v34_v55  ;;  %303 = vmatpush.msrb.mxu1 %v65_v57 }
  0x20   :  { %150 = vmatpush.msra.mxu0 %v30_v58  ;;  %353 = vmatpush.msrb.mxu3 %v86_v63 }
  0x21   :  { %232 = vmatpush.msra.mxu2 %v31_v59  ;;  %151 = vmatmul.f32.vlgmr.msra.gmra.mxu0 %v712_v60 }
  0x22   :  { %233 = vmatmul.f32.vlgmr.msra.gmra.mxu2 %v712_v60  ;;  %422 = vmatmul.msk.f32.gmra.mxu3 %vm110_vm0, %v717_v61 }
  0x23   :  { %266 = vmatpush.msrb.mxu2 %v478_v2  ;;  %304 = vmatpush.msrb.mxu1 %v62_v62  ;;  %v16_v2 = vld [vmem:[%s973_s0 + $0x10] sm:$0xff] }
  0x24   :  { %184 = vmatpush.msrb.mxu0 %v498_v7  ;;  %414 = vmatmul.msk.f32.gmra.mxu1 %vm110_vm0, %v717_v61  ;;  %v80_v7 = vld [vmem:[%s972_s1 + $0x190] sm:$0xff] }
  0x25   :  { %305 = vmatpush.msrb.mxu1 %v59_v0  ;;  %267 = vmatpush.msrb.mxu2 %v489_v5  ;;  %v50_v5 = vld [vmem:[%s972_s1 + $0xa0] sm:$0xff] }
  0x26   :  { %185 = vmatpush.msrb.mxu0 %v511_v10  ;;  %354 = vmatpush.msrb.mxu3 %v83_v3  ;;  %v18_v10 = vld [vmem:[%s973_s0 + $0x20] sm:$0xff] }
  0x27   :  { %306 = vmatpush.msrb.mxu1 %v56_v1  ;;  %268 = vmatpush.msrb.mxu2 %v506_v9  ;;  %v44_v9 = vld [vmem:[%s972_s1 + $0x70] sm:$0xff] }
  0x28   :  { %186 = vmatpush.msrb.mxu0 %v529_v14  ;;  %355 = vmatpush.msrb.mxu3 %v80_v7  ;;  %v35_v14 = vld [vmem:[%s972_s1 + $0x28] sm:$0xff] }
  0x29   :  { %154 = vmatmul.f32.gmra.mxu0 %v16_v2  ;;  %307 = vmatpush.msrb.mxu1 %v53_v4 }
  0x2a   :  { %236 = vmatmul.f32.gmra.mxu2 %v16_v2  ;;  %423 = vmatmul.msk.f32.gmra.mxu3 %vm110_vm0, %v753_v6 }
  0x2b   :  { %308 = vmatpush.msrb.mxu1 %v50_v5  ;;  %269 = vmatpush.msrb.mxu2 %v524_v13  ;;  %v38_v13 = vld [vmem:[%s972_s1 + $0x40] sm:$0xff] }
  0x2c   :  { %187 = vmatpush.msrb.mxu0 %v547_v18  ;;  %415 = vmatmul.msk.f32.gmra.mxu1 %vm110_vm0, %v753_v6  ;;  %v22_v18 = vld [vmem:[%s973_s0 + $0x40] sm:$0xff] }
  0x2d   :  { %309 = vmatpush.msrb.mxu1 %v47_v8  ;;  %270 = vmatpush.msrb.mxu2 %v542_v17  ;;  %v15_v17 = vld [vmem:[%s973_s0 + $0x8] sm:$0xff] }
  0x2e   :  { %188 = vmatpush.msrb.mxu0 %v565_v22  ;;  %v26_v22 = vld [vmem:[%s973_s0 + $0x60] sm:$0xff] }
  0x2f   :  { %310 = vmatpush.msrb.mxu1 %v44_v9  ;;  %271 = vmatpush.msrb.mxu2 %v560_v21  ;;  %v19_v21 = vld [vmem:[%s973_s0 + $0x28] sm:$0xff] }
  0x30   :  { %189 = vmatpush.msrb.mxu0 %v583_v26 }
  0x31   :  { %157 = vmatmul.f32.gmra.mxu0 %v18_v10  ;;  %311 = vmatpush.msrb.mxu1 %v41_v11 }
  0x32   :  { %239 = vmatmul.f32.gmra.mxu2 %v18_v10  ;;  %424 = vmatmul.msk.f32.gmra.mxu3 %vm110_vm0, %v29_v12 }
  0x33   :  { %312 = vmatpush.msrb.mxu1 %v38_v13  ;;  %272 = vmatpush.msrb.mxu2 %v578_v25 }
  0x34   :  { %190 = vmatpush.msrb.mxu0 %v601_v30  ;;  %416 = vmatmul.msk.f32.gmra.mxu1 %vm110_vm0, %v29_v12 }
  0x35   :  { %313 = vmatpush.msrb.mxu1 %v35_v14  ;;  %273 = vmatpush.msrb.mxu2 %v596_v29 }
  0x36   :  { %191 = vmatpush.msrb.mxu0 %v627_v36 }
  0x37   :  { %314 = vmatpush.msrb.mxu1 %v32_v15 }
  0x39   :  { %160 = vmatmul.f32.gmra.mxu0 %v20_v16 }
  0x3a   :  { %242 = vmatmul.f32.gmra.mxu2 %v20_v16  ;;  %425 = vmatmul.msk.f32.vlgmr.msrb.gmra.mxu3 %vm110_vm0, %v15_v17 }
  0x3c   :  { %315 = vmatmul.f32.vlgmr.msrb.gmra.mxu1 %v712_v60 }
  0x41   :  { %163 = vmatmul.f32.gmra.mxu0 %v22_v18 }
  0x42   :  { %245 = vmatmul.f32.gmra.mxu2 %v22_v18  ;;  %426 = vmatmul.msk.f32.gmra.mxu3 %vm110_vm0, %v17_v19 }
  0x44   :  { %318 = vmatmul.f32.gmra.mxu1 %v16_v2 }
  0x49   :  { %166 = vmatmul.f32.gmra.mxu0 %v24_v20 }
  0x4a   :  { %248 = vmatmul.f32.gmra.mxu2 %v24_v20  ;;  %427 = vmatmul.msk.f32.gmra.mxu3 %vm110_vm0, %v19_v21 }
  0x4c   :  { %321 = vmatmul.f32.gmra.mxu1 %v18_v10 }
  0x51   :  { %169 = vmatmul.f32.gmra.mxu0 %v26_v22 }
  0x52   :  { %251 = vmatmul.f32.gmra.mxu2 %v26_v22  ;;  %428 = vmatmul.msk.f32.gmra.mxu3 %vm110_vm0, %v608_v31 }
  0x54   :  { %324 = vmatmul.f32.gmra.mxu1 %v20_v16 }
  0x59   :  { %172 = vmatmul.f32.gmra.mxu0 %v28_v23 }
  0x5a   :  { %254 = vmatmul.f32.gmra.mxu2 %v28_v23  ;;  %429 = vmatmul.msk.f32.gmra.mxu3 %vm110_vm0, %v664_v46 }
  0x5c   :  { %327 = vmatmul.f32.gmra.mxu1 %v22_v18 }
  0x61   :  { %409 = vmatmul.msk.f32.vlgmr.msrb.gmra.mxu0 %vm110_vm0, %v15_v17 }
  0x62   :  { %417 = vmatmul.msk.f32.vlgmr.msrb.gmra.mxu2 %vm110_vm0, %v15_v17  ;;  %430 = vmatmul.msk.f32.gmra.mxu3 %vm110_vm0, %v717_v61 }
  0x64   :  { %330 = vmatmul.f32.gmra.mxu1 %v24_v20 }
  0x69   :  { %410 = vmatmul.msk.f32.gmra.mxu0 %vm110_vm0, %v17_v19 }
  0x6a   :  { %418 = vmatmul.msk.f32.gmra.mxu2 %vm110_vm0, %v17_v19  ;;  %431 = vmatmul.msk.f32.gmra.mxu3 %vm110_vm0, %v753_v6 }
  0x6c   :  { %333 = vmatmul.f32.gmra.mxu1 %v26_v22 }
  0x71   :  { %411 = vmatmul.msk.f32.gmra.mxu0 %vm110_vm0, %v19_v21 }
  0x72   :  { %419 = vmatmul.msk.f32.gmra.mxu2 %vm110_vm0, %v19_v21  ;;  %432 = vmatmul.msk.f32.gmra.mxu3 %vm110_vm0, %v29_v12 }
  0x74   :  { %336 = vmatmul.f32.gmra.mxu1 %v28_v23 }
  0x91   :  { %v202_v24 = vpop.f32.mrf.mxu1 }
  0x95   :  { %v284_v25 = vpop.f32.mrf.mxu3 }
  0x99   :  { %v205_v26 = vpop.f32.mrf.mxu1 }
  0x9d   :  { %v287_v27 = vpop.f32.mrf.mxu3 }
  0x9e   :  { %v846_v28 = vpop.f32.mrf.mxu0 }
  0xa1   :  { %v208_v29 = vpop.f32.mrf.mxu1 }
  0xa5   :  { %v848_v30 = vpop.f32.mrf.mxu2  ;;  %v290_v31 = vpop.f32.mrf.mxu3 }
  0xa6   :  { %v850_v32 = vpop.f32.mrf.mxu0 }
  0xa9   :  { %v211_v33 = vpop.f32.mrf.mxu1 }
  0xad   :  { %v852_v34 = vpop.f32.mrf.mxu2  ;;  %v293_v35 = vpop.f32.mrf.mxu3 }
  0xae   :  { %v854_v36 = vpop.f32.mrf.mxu0 }
  0xb1   :  { %v214_v38 = vpop.f32.mrf.mxu1 }
  0xb5   :  { %v861_v40 = vpop.f32.mrf.mxu2  ;;  %v863_v41 = vpop.f32.mrf.mxu3 }
  0xb6   :  { %v161_v42 = vpop.f32.mrf.mxu0 }
  0xb7   :  { %v162_v43 = vadd.f32 %v161_v42, %v859_v39 }
  0xb9   :  { %v203_v45 = vadd.f32 %v202_v24, %v162_v43  ;;  %v316_v46 = vpop.f32.mrf.mxu1 }
  0xba   :  { %v317_v48 = vadd.f32 %v316_v46, %v866_v44 }
  0xbb   :  { %390 = vst [vmem:[%s975_s3 + $0x48] sm:$0xff] %v203_v45 }
  0xbd   :  { %v243_v49 = vpop.f32.mrf.mxu2  ;;  %v357_v50 = vpop.f32.mrf.mxu3 }
  0xbe   :  { %v244_v51 = vadd.f32 %v243_v49, %v871_v47  ;;  %v358_v52 = vadd.f32 %v357_v50, %v317_v48  ;;  %v164_v53 = vpop.f32.mrf.mxu0 }
  0xbf   :  { %v165_v54 = vadd.f32 %v164_v53, %v859_v39 }
  0xc0   :  { %v285_v55 = vadd.f32 %v284_v25, %v244_v51  ;;  %383 = vst [vmem:[%s975_s3 + $0x10] sm:$0xff] %v358_v52  ;;  %v153_v25 = vadd.f32 %v846_v28, %v859_v39  ;;  %v159_v52 = vadd.f32 %v854_v36, %v859_v39  ;;  %v241_v36 = vadd.f32 %v861_v40, %v871_v47 }
  0xc1   :  { %v206_v56 = vadd.f32 %v205_v26, %v165_v54  ;;  %v319_v57 = vpop.f32.mrf.mxu1 }
  0xc2   :  { %391 = vst [vmem:[%s975_s3 + $0x50] sm:$0xff] %v285_v55  ;;  %v320_v58 = vadd.f32 %v319_v57, %v866_v44 }
  0xc3   :  { %393 = vst [vmem:[%s975_s3 + $0x60] sm:$0xff] %v206_v56 }
  0xc5   :  { %v246_v59 = vpop.f32.mrf.mxu2  ;;  %v360_v60 = vpop.f32.mrf.mxu3 }
  0xc6   :  { %v247_v61 = vadd.f32 %v246_v59, %v871_v47  ;;  %v361_v62 = vadd.f32 %v360_v60, %v320_v58  ;;  %v167_v63 = vpop.f32.mrf.mxu0 }
  0xc7   :  { %v168_v0 = vadd.f32 %v167_v63, %v859_v39 }
  0xc8   :  { %v288_v1 = vadd.f32 %v287_v27, %v247_v61  ;;  %386 = vst [vmem:[%s975_s3 + $0x28] sm:$0xff] %v361_v62 }
  0xc9   :  { %v209_v3 = vadd.f32 %v208_v29, %v168_v0  ;;  %v322_v2 = vpop.f32.mrf.mxu1 }
  0xca   :  { %394 = vst [vmem:[%s975_s3 + $0x68] sm:$0xff] %v288_v1  ;;  %v323_v4 = vadd.f32 %v322_v2, %v866_v44 }
  0xcb   :  { %396 = vst [vmem:[%s975_s3 + $0x78] sm:$0xff] %v209_v3 }
  0xcd   :  { %v249_v6 = vpop.f32.mrf.mxu2  ;;  %v363_v5 = vpop.f32.mrf.mxu3 }
  0xce   :  { %v250_v7 = vadd.f32 %v249_v6, %v871_v47  ;;  %v364_v8 = vadd.f32 %v363_v5, %v323_v4  ;;  %v170_v9 = vpop.f32.mrf.mxu0 }
  0xcf   :  { %v171_v10 = vadd.f32 %v170_v9, %v859_v39 }
  0xd0   :  { %v291_v11 = vadd.f32 %v290_v31, %v250_v7  ;;  %389 = vst [vmem:[%s975_s3 + $0x40] sm:$0xff] %v364_v8 }
  0xd1   :  { %v212_v12 = vadd.f32 %v211_v33, %v171_v10  ;;  %v325_v13 = vpop.f32.mrf.mxu1 }
  0xd2   :  { %397 = vst [vmem:[%s975_s3 + $0x80] sm:$0xff] %v291_v11  ;;  %v326_v14 = vadd.f32 %v325_v13, %v866_v44 }
  0xd3   :  { %399 = vst [vmem:[%s975_s3 + $0x90] sm:$0xff] %v212_v12 }
  0xd5   :  { %v252_v15 = vpop.f32.mrf.mxu2  ;;  %v366_v16 = vpop.f32.mrf.mxu3 }
  0xd6   :  { %v253_v17 = vadd.f32 %v252_v15, %v871_v47  ;;  %v367_v18 = vadd.f32 %v366_v16, %v326_v14  ;;  %v173_v19 = vpop.f32.mrf.mxu0 }
  0xd7   :  { %v174_v20 = vadd.f32 %v173_v19, %v859_v39 }
  0xd8   :  { %v294_v21 = vadd.f32 %v293_v35, %v253_v17  ;;  %392 = vst [vmem:[%s975_s3 + $0x58] sm:$0xff] %v367_v18 }
  0xd9   :  { %v215_v22 = vadd.f32 %v214_v38, %v174_v20  ;;  %v328_v23 = vpop.f32.mrf.mxu1  ;;  %v235_v38 = vadd.f32 %v848_v30, %v871_v47 }
  0xda   :  { %400 = vst [vmem:[%s975_s3 + $0x98] sm:$0xff] %v294_v21  ;;  %v329_v24 = vadd.f32 %v328_v23, %v866_v44 }
  0xdb   :  { %402 = vst [vmem:[%s975_s3 + $0xa8] sm:$0xff] %v215_v22 }
  0xdd   :  { %v255_v26 = vpop.f32.mrf.mxu2  ;;  %v369_v27 = vpop.f32.mrf.mxu3 }
  0xde   :  { %v256_v29 = vadd.f32 %v255_v26, %v871_v47  ;;  %v370_v31 = vadd.f32 %v369_v27, %v329_v24  ;;  %v193_v33 = vpop.f32.mrf.mxu0 }
  0xdf   :  { %v194_v35 = vadd.f32 %v193_v33, %v153_v25 }
  0xe0   :  { %v297_v37 = vadd.f32 %v863_v41, %v256_v29  ;;  %395 = vst [vmem:[%s975_s3 + $0x70] sm:$0xff] %v370_v31  ;;  %v156_v41 = vadd.f32 %v850_v32, %v859_v39  ;;  %v238_v32 = vadd.f32 %v852_v34, %v871_v47 }
  0xe1   :  { %381 = vst [vmem:[%s975_s3] sm:$0xff] %v194_v35  ;;  %v331_v28 = vpop.f32.mrf.mxu1 }
  0xe2   :  { %403 = vst [vmem:[%s975_s3 + $0xb0] sm:$0xff] %v297_v37  ;;  %v332_v42 = vadd.f32 %v331_v28, %v866_v44 }
  0xe5   :  { %v275_v43 = vpop.f32.mrf.mxu2  ;;  %v372_v45 = vpop.f32.mrf.mxu3 }
  0xe6   :  { %v276_v46 = vadd.f32 %v275_v43, %v235_v38  ;;  %v373_v48 = vadd.f32 %v372_v45, %v332_v42  ;;  %v196_v49 = vpop.f32.mrf.mxu0 }
  0xe7   :  { %v197_v50 = vadd.f32 %v196_v49, %v156_v41 }
  0xe8   :  { %382 = vst [vmem:[%s975_s3 + $0x8] sm:$0xff] %v276_v46 }
  0xe9   :  { %398 = vst [vmem:[%s975_s3 + $0x88] sm:$0xff] %v373_v48  ;;  %v334_v30 = vpop.f32.mrf.mxu1 }
  0xea   :  { %384 = vst [vmem:[%s975_s3 + $0x18] sm:$0xff] %v197_v50  ;;  %v335_v51 = vadd.f32 %v334_v30, %v866_v44 }
  0xed   :  { %v278_v53 = vpop.f32.mrf.mxu2  ;;  %v375_v54 = vpop.f32.mrf.mxu3 }
  0xee   :  { %v279_v55 = vadd.f32 %v278_v53, %v238_v32  ;;  %v376_v56 = vadd.f32 %v375_v54, %v335_v51  ;;  %v199_v57 = vpop.f32.mrf.mxu0 }
  0xef   :  { %v200_v58 = vadd.f32 %v199_v57, %v159_v52 }
  0xf0   :  { %385 = vst [vmem:[%s975_s3 + $0x20] sm:$0xff] %v279_v55 }
  0xf1   :  { %401 = vst [vmem:[%s975_s3 + $0xa0] sm:$0xff] %v376_v56  ;;  %v337_v34 = vpop.f32.mrf.mxu1 }
  0xf2   :  { %387 = vst [vmem:[%s975_s3 + $0x30] sm:$0xff] %v200_v58  ;;  %v338_v39 = vadd.f32 %v337_v34, %v866_v44 }
  0xf5   :  { %v281_v59 = vpop.f32.mrf.mxu2  ;;  %v378_v60 = vpop.f32.mrf.mxu3 }
  0xf6   :  { %v282_v61 = vadd.f32 %v281_v59, %v241_v36  ;;  %v379_v62 = vadd.f32 %v378_v60, %v338_v39 }
  0xf8   :  { %388 = vst [vmem:[%s975_s3 + $0x38] sm:$0xff] %v282_v61 }
  0xf9   :  { %404 = vst [vmem:[%s975_s3 + $0xb8] sm:$0xff] %v379_v62 }

// kernel: _lambda_.4
= control target key start
LH: loop header
LB: loop body
LE: loop exit
PB: predicated region body
PF: predicated region fallthrough
CT: control target
= control target key end

     0   :  { %s2502_s1 = inlined_call_operand.vmem [shape: f32[128,384], index: 1, kind: input, shape index: {}]   ;;  %s2503_s3 = inlined_call_operand.vmem [shape: f32[8,128], index: 3, kind: input, shape index: {}]   ;;  %s2504_s2 = inlined_call_operand.vmem [shape: f32[1,384], index: 2, kind: input, shape index: {}]   ;;  %s2505_s0 = inlined_call_operand.vmem [shape: f32[8,8,384], index: 0, kind: input, shape index: {}]   ;;  %s2506_s4 = inlined_call_operand.vmem [shape: f32[8,8,128], index: 4, kind: output, shape index: {}]  }
   0x1   :  { %v1468_v0 = vld [vmem:[%s2502_s1 + $0x168] sm:$0xff]  ;;  %v1473_v1 = vld [vmem:[%s2502_s1 + $0x170] sm:$0xff]  ;;  %v1485_v3 = vld [vmem:[%s2502_s1 + $0x158] sm:$0xff] }
   0x2   :  { %v1478_v2 = vld [vmem:[%s2502_s1 + $0x150] sm:$0xff]  ;;  %77 = vmatpush.msra.mxu0 %v1468_v0  ;;  %97 = vmatpush.msra.mxu1 %v1473_v1  ;;  %v1490_v4 = vld [vmem:[%s2502_s1 + $0x138] sm:$0xff]  ;;  %v1495_v5 = vld [vmem:[%s2502_s1 + $0x140] sm:$0xff] }
   0x3   :  { %237 = vmatpush.msra.mxu3 %v1468_v0  ;;  %v1503_v6 = vld [vmem:[%s2502_s1 + $0x120] sm:$0xff]  ;;  %v1508_v7 = vld [vmem:[%s2502_s1 + $0x128] sm:$0xff]  ;;  %v1521_v9 = vld [vmem:[%s2502_s1 + $0x110] sm:$0xff] }
   0x4   :  { %78 = vmatpush.msra.mxu0 %v1478_v2  ;;  %98 = vmatpush.msra.mxu1 %v1485_v3  ;;  %v1516_v8 = vld [vmem:[%s2502_s1 + $0x108] sm:$0xff]  ;;  %v1529_v10 = vld [vmem:[%s2502_s1 + $0xf0] sm:$0xff]  ;;  %v1534_v11 = vld [vmem:[%s2502_s1 + $0xf8] sm:$0xff] }
   0x5   :  { %238 = vmatpush.msra.mxu3 %v1478_v2  ;;  %v1539_v12 = vld [vmem:[%s2502_s1 + $0x178] sm:$0xff]  ;;  %v1547_v13 = vld [vmem:[%s2502_s1 + $0x160] sm:$0xff]  ;;  %v1566_v16 = vld [vmem:[%s2502_s1 + $0x148] sm:$0xff] }
   0x6   :  { %79 = vmatpush.msra.mxu0 %v1490_v4  ;;  %99 = vmatpush.msra.mxu1 %v1495_v5  ;;  %v1552_v14 = vld [vmem:[%s2502_s1 + $0xd8] sm:$0xff]  ;;  %v1557_v15 = vld [vmem:[%s2502_s1 + $0xe0] sm:$0xff]  ;;  %v1576_v18 = vld [vmem:[%s2502_s1 + $0xc8] sm:$0xff] }
   0x7   :  { %239 = vmatpush.msra.mxu3 %v1490_v4  ;;  %117 = vmatpush.msra.mxu2 %v1539_v12  ;;  %v1571_v17 = vld [vmem:[%s2502_s1 + $0xc0] sm:$0xff]  ;;  %v1585_v19 = vld [vmem:[%s2502_s1 + $0x130] sm:$0xff]  ;;  %v1590_v20 = vld [vmem:[%s2502_s1 + $0xa8] sm:$0xff] }
   0x8   :  { %80 = vmatpush.msra.mxu0 %v1503_v6  ;;  %100 = vmatpush.msra.mxu1 %v1508_v7  ;;  %v1595_v21 = vld [vmem:[%s2502_s1 + $0xb0] sm:$0xff]  ;;  %v1604_v22 = vld [vmem:[%s2502_s1 + $0x118] sm:$0xff]  ;;  %v1623_v25 = vld [vmem:[%s2502_s1 + $0x100] sm:$0xff] }
   0x9   :  { %240 = vmatpush.msra.mxu3 %v1503_v6  ;;  %118 = vmatpush.msra.mxu2 %v1547_v13  ;;  %v1609_v23 = vld [vmem:[%s2502_s1 + $0x90] sm:$0xff]  ;;  %v1614_v24 = vld [vmem:[%s2502_s1 + $0x98] sm:$0xff]  ;;  %v1633_v27 = vld [vmem:[%s2502_s1 + $0x80] sm:$0xff] }
   0xa   :  { %81 = vmatpush.msra.mxu0 %v1516_v8  ;;  %101 = vmatpush.msra.mxu1 %v1521_v9  ;;  %v1628_v26 = vld [vmem:[%s2502_s1 + $0x78] sm:$0xff]  ;;  %v1642_v28 = vld [vmem:[%s2502_s1 + $0xe8] sm:$0xff]  ;;  %v1647_v29 = vld [vmem:[%s2502_s1 + $0x60] sm:$0xff] }
   0xb   :  { %241 = vmatpush.msra.mxu3 %v1516_v8  ;;  %119 = vmatpush.msra.mxu2 %v1566_v16  ;;  %v1652_v30 = vld [vmem:[%s2502_s1 + $0x68] sm:$0xff]  ;;  %v1661_v31 = vld [vmem:[%s2502_s1 + $0xd0] sm:$0xff]  ;;  %v1680_v34 = vld [vmem:[%s2502_s1 + $0xb8] sm:$0xff] }
   0xc   :  { %82 = vmatpush.msra.mxu0 %v1529_v10  ;;  %102 = vmatpush.msra.mxu1 %v1534_v11  ;;  %v1666_v32 = vld [vmem:[%s2502_s1 + $0x48] sm:$0xff]  ;;  %v1671_v33 = vld [vmem:[%s2502_s1 + $0x50] sm:$0xff]  ;;  %v1690_v36 = vld [vmem:[%s2502_s1 + $0x38] sm:$0xff] }
   0xd   :  { %242 = vmatpush.msra.mxu3 %v1529_v10  ;;  %120 = vmatpush.msra.mxu2 %v1585_v19  ;;  %v1685_v35 = vld [vmem:[%s2502_s1 + $0x30] sm:$0xff]  ;;  %v1699_v37 = vld [vmem:[%s2502_s1 + $0xa0] sm:$0xff]  ;;  %v1704_v38 = vld [vmem:[%s2502_s1 + $0x18] sm:$0xff] }
   0xe   :  { %83 = vmatpush.msra.mxu0 %v1552_v14  ;;  %103 = vmatpush.msra.mxu1 %v1557_v15  ;;  %v1709_v39 = vld [vmem:[%s2502_s1 + $0x20] sm:$0xff]  ;;  %v1718_v40 = vld [vmem:[%s2502_s1 + $0x88] sm:$0xff]  ;;  %v1743_v44 = vld [vmem:[%s2502_s1 + $0x70] sm:$0xff] }
   0xf   :  { %243 = vmatpush.msra.mxu3 %v1552_v14  ;;  %121 = vmatpush.msra.mxu2 %v1604_v22  ;;  %v1723_v41 = vld [vmem:[%s2502_s1] sm:$0xff]  ;;  %v1728_v42 = vld [vmem:[%s2502_s1 + $0x8] sm:$0xff]  ;;  %v1753_v45 = vld [vmem:[%s2502_s1 + $0x58] sm:$0xff] }
  0x10   :  { %84 = vmatpush.msra.mxu0 %v1571_v17  ;;  %104 = vmatpush.msra.mxu1 %v1576_v18  ;;  %v1737_v43 = vld [vmem:[%s2503_s3] sm:$0xff]  ;;  %v1769_v47 = vld [vmem:[%s2502_s1 + $0x28] sm:$0xff]  ;;  %v1778_v48 = vld [vmem:[%s2502_s1 + $0x10] sm:$0xff] }
  0x11   :  { %244 = vmatpush.msra.mxu3 %v1571_v17  ;;  %122 = vmatpush.msra.mxu2 %v1623_v25  ;;  %v1760_v46 = vld [vmem:[%s2502_s1 + $0x40] sm:$0xff]  ;;  %v27_v54 = vld [vmem:[%s2505_s0 + $0x8] sm:$0xff] }
  0x12   :  { %85 = vmatpush.msra.mxu0 %v1590_v20  ;;  %105 = vmatpush.msra.mxu1 %v1595_v21  ;;  %v17_v49 = vld [vmem:[%s2504_s2] sm:$0x7] }
  0x13   :  { %245 = vmatpush.msra.mxu3 %v1590_v20  ;;  %123 = vmatpush.msra.mxu2 %v1642_v28  ;;  %v1892_v50 = vperm.slane %v17_v49, 0  ;;  %v1894_v51 = vperm.slane %v17_v49, 1  ;;  %v26_v52 = vld [vmem:[%s2505_s0] sm:$0xff] }
  0x14   :  { %86 = vmatpush.msra.mxu0 %v1609_v23  ;;  %106 = vmatpush.msra.mxu1 %v1614_v24 }
  0x15   :  { %246 = vmatpush.msra.mxu3 %v1609_v23  ;;  %124 = vmatpush.msra.mxu2 %v1661_v31  ;;  %2511 = vst [vmem:[#allocation2_spill] sm:$0xff] %v1892_v50 }
  0x16   :  { %87 = vmatpush.msra.mxu0 %v1628_v26  ;;  %107 = vmatpush.msra.mxu1 %v1633_v27  ;;  %2512 = vst [vmem:[#allocation3_spill] sm:$0xff] %v1894_v51 }
  0x17   :  { %247 = vmatpush.msra.mxu3 %v1628_v26  ;;  %125 = vmatpush.msra.mxu2 %v1680_v34 }
  0x18   :  { %88 = vmatpush.msra.mxu0 %v1647_v29  ;;  %108 = vmatpush.msra.mxu1 %v1652_v30 }
  0x19   :  { %248 = vmatpush.msra.mxu3 %v1647_v29  ;;  %126 = vmatpush.msra.mxu2 %v1699_v37 }
  0x1a   :  { %89 = vmatpush.msra.mxu0 %v1666_v32  ;;  %109 = vmatpush.msra.mxu1 %v1671_v33 }
  0x1b   :  { %249 = vmatpush.msra.mxu3 %v1666_v32  ;;  %127 = vmatpush.msra.mxu2 %v1718_v40 }
  0x1c   :  { %90 = vmatpush.msra.mxu0 %v1685_v35  ;;  %110 = vmatpush.msra.mxu1 %v1690_v36 }
  0x1d   :  { %250 = vmatpush.msra.mxu3 %v1685_v35  ;;  %128 = vmatpush.msra.mxu2 %v1743_v44 }
  0x1e   :  { %91 = vmatpush.msra.mxu0 %v1704_v38  ;;  %111 = vmatpush.msra.mxu1 %v1709_v39 }
  0x1f   :  { %251 = vmatpush.msra.mxu3 %v1704_v38  ;;  %129 = vmatpush.msra.mxu2 %v1753_v45 }
  0x20   :  { %92 = vmatpush.msra.mxu0 %v1723_v41  ;;  %112 = vmatpush.msra.mxu1 %v1728_v42 }
  0x21   :  { %93 = vmatmul.f32.vlgmr.msra.gmra.mxu0 %v1737_v43  ;;  %113 = vmatmul.f32.vlgmr.msra.gmra.mxu1 %v1737_v43 }
  0x22   :  { %257 = vmatpush.msrb.mxu0 %v1473_v1  ;;  %277 = vmatpush.msrb.mxu1 %v1539_v12 }
  0x23   :  { %252 = vmatpush.msra.mxu3 %v1723_v41  ;;  %130 = vmatpush.msra.mxu2 %v1760_v46 }
  0x24   :  { %258 = vmatpush.msrb.mxu0 %v1485_v3  ;;  %278 = vmatpush.msrb.mxu1 %v1547_v13 }
  0x25   :  { %418 = vmatpush.msrb.mxu3 %v1473_v1  ;;  %131 = vmatpush.msra.mxu2 %v1769_v47 }
  0x26   :  { %259 = vmatpush.msrb.mxu0 %v1495_v5  ;;  %279 = vmatpush.msrb.mxu1 %v1566_v16 }
  0x27   :  { %419 = vmatpush.msrb.mxu3 %v1485_v3  ;;  %132 = vmatpush.msra.mxu2 %v1778_v48 }
  0x28   :  { %260 = vmatpush.msrb.mxu0 %v1508_v7  ;;  %280 = vmatpush.msrb.mxu1 %v1585_v19 }
  0x29   :  { %420 = vmatpush.msrb.mxu3 %v1495_v5  ;;  %133 = vmatmul.f32.vlgmr.msra.gmra.mxu2 %v1737_v43 }
  0x2a   :  { %261 = vmatpush.msrb.mxu0 %v1521_v9  ;;  %281 = vmatpush.msrb.mxu1 %v1604_v22 }
  0x2b   :  { %398 = vmatpush.msrb.mxu2 %v1468_v0  ;;  %421 = vmatpush.msrb.mxu3 %v1508_v7 }
  0x2c   :  { %262 = vmatpush.msrb.mxu0 %v1534_v11  ;;  %282 = vmatpush.msrb.mxu1 %v1623_v25 }
  0x2d   :  { %399 = vmatpush.msrb.mxu2 %v1478_v2  ;;  %422 = vmatpush.msrb.mxu3 %v1521_v9 }
  0x2e   :  { %263 = vmatpush.msrb.mxu0 %v1557_v15  ;;  %283 = vmatpush.msrb.mxu1 %v1642_v28 }
  0x2f   :  { %400 = vmatpush.msrb.mxu2 %v1490_v4  ;;  %423 = vmatpush.msrb.mxu3 %v1534_v11 }
  0x30   :  { %264 = vmatpush.msrb.mxu0 %v1576_v18  ;;  %284 = vmatpush.msrb.mxu1 %v1661_v31 }
  0x31   :  { %401 = vmatpush.msrb.mxu2 %v1503_v6  ;;  %424 = vmatpush.msrb.mxu3 %v1557_v15 }
  0x32   :  { %265 = vmatpush.msrb.mxu0 %v1595_v21  ;;  %285 = vmatpush.msrb.mxu1 %v1680_v34 }
  0x33   :  { %402 = vmatpush.msrb.mxu2 %v1516_v8  ;;  %425 = vmatpush.msrb.mxu3 %v1576_v18 }
  0x34   :  { %266 = vmatpush.msrb.mxu0 %v1614_v24  ;;  %286 = vmatpush.msrb.mxu1 %v1699_v37 }
  0x35   :  { %403 = vmatpush.msrb.mxu2 %v1529_v10  ;;  %426 = vmatpush.msrb.mxu3 %v1595_v21 }
  0x36   :  { %267 = vmatpush.msrb.mxu0 %v1633_v27  ;;  %287 = vmatpush.msrb.mxu1 %v1718_v40 }
  0x37   :  { %404 = vmatpush.msrb.mxu2 %v1552_v14  ;;  %427 = vmatpush.msrb.mxu3 %v1614_v24 }
  0x38   :  { %268 = vmatpush.msrb.mxu0 %v1652_v30  ;;  %288 = vmatpush.msrb.mxu1 %v1743_v44 }
  0x39   :  { %405 = vmatpush.msrb.mxu2 %v1571_v17  ;;  %428 = vmatpush.msrb.mxu3 %v1633_v27 }
  0x3a   :  { %269 = vmatpush.msrb.mxu0 %v1671_v33  ;;  %289 = vmatpush.msrb.mxu1 %v1753_v45 }
  0x3b   :  { %406 = vmatpush.msrb.mxu2 %v1590_v20  ;;  %429 = vmatpush.msrb.mxu3 %v1652_v30 }
  0x3c   :  { %270 = vmatpush.msrb.mxu0 %v1690_v36  ;;  %290 = vmatpush.msrb.mxu1 %v1760_v46 }
  0x3d   :  { %407 = vmatpush.msrb.mxu2 %v1609_v23  ;;  %430 = vmatpush.msrb.mxu3 %v1671_v33 }
  0x3e   :  { %271 = vmatpush.msrb.mxu0 %v1709_v39  ;;  %291 = vmatpush.msrb.mxu1 %v1769_v47 }
  0x3f   :  { %408 = vmatpush.msrb.mxu2 %v1628_v26  ;;  %431 = vmatpush.msrb.mxu3 %v1690_v36 }
  0x40   :  { %272 = vmatpush.msrb.mxu0 %v1728_v42  ;;  %292 = vmatpush.msrb.mxu1 %v1778_v48 }
  0x41   :  { %409 = vmatpush.msrb.mxu2 %v1647_v29  ;;  %432 = vmatpush.msrb.mxu3 %v1709_v39 }
  0x42   :  { %438 = vmatpush.msra.mxu0 %v1539_v12  ;;  %559 = vmatpush.msra.mxu1 %v1468_v0 }
  0x43   :  { %410 = vmatpush.msrb.mxu2 %v1666_v32  ;;  %433 = vmatpush.msrb.mxu3 %v1728_v42 }
  0x44   :  { %439 = vmatpush.msra.mxu0 %v1547_v13  ;;  %560 = vmatpush.msra.mxu1 %v1478_v2 }
  0x45   :  { %411 = vmatpush.msrb.mxu2 %v1685_v35 }
  0x46   :  { %440 = vmatpush.msra.mxu0 %v1566_v16  ;;  %561 = vmatpush.msra.mxu1 %v1490_v4 }
  0x47   :  { %412 = vmatpush.msrb.mxu2 %v1704_v38 }
  0x48   :  { %441 = vmatpush.msra.mxu0 %v1585_v19  ;;  %562 = vmatpush.msra.mxu1 %v1503_v6  ;;  %v1904_v6 = vperm.slane %v17_v49, 2 }
  0x49   :  { %413 = vmatpush.msrb.mxu2 %v1723_v41 }
  0x4a   :  { %442 = vmatpush.msra.mxu0 %v1604_v22  ;;  %563 = vmatpush.msra.mxu1 %v1516_v8 }
  0x4b   :  { %579 = vmatpush.msra.mxu2 %v1473_v1 }
  0x4c   :  { %443 = vmatpush.msra.mxu0 %v1623_v25  ;;  %564 = vmatpush.msra.mxu1 %v1529_v10 }
  0x4d   :  { %580 = vmatpush.msra.mxu2 %v1485_v3 }
  0x4e   :  { %444 = vmatpush.msra.mxu0 %v1642_v28  ;;  %565 = vmatpush.msra.mxu1 %v1552_v14 }
  0x4f   :  { %581 = vmatpush.msra.mxu2 %v1495_v5 }
  0x50   :  { %445 = vmatpush.msra.mxu0 %v1661_v31  ;;  %566 = vmatpush.msra.mxu1 %v1571_v17 }
  0x51   :  { %582 = vmatpush.msra.mxu2 %v1508_v7 }
  0x52   :  { %446 = vmatpush.msra.mxu0 %v1680_v34  ;;  %567 = vmatpush.msra.mxu1 %v1590_v20 }
  0x53   :  { %583 = vmatpush.msra.mxu2 %v1521_v9 }
  0x54   :  { %447 = vmatpush.msra.mxu0 %v1699_v37  ;;  %568 = vmatpush.msra.mxu1 %v1609_v23  ;;  %v28_v23 = vld [vmem:[%s2505_s0 + $0x10] sm:$0xff] }
  0x55   :  { %584 = vmatpush.msra.mxu2 %v1534_v11 }
  0x56   :  { %448 = vmatpush.msra.mxu0 %v1718_v40  ;;  %569 = vmatpush.msra.mxu1 %v1628_v26 }
  0x57   :  { %585 = vmatpush.msra.mxu2 %v1557_v15 }
  0x58   :  { %449 = vmatpush.msra.mxu0 %v1743_v44  ;;  %570 = vmatpush.msra.mxu1 %v1647_v29 }
  0x59   :  { %586 = vmatpush.msra.mxu2 %v1576_v18 }
  0x5a   :  { %450 = vmatpush.msra.mxu0 %v1753_v45  ;;  %571 = vmatpush.msra.mxu1 %v1666_v32 }
  0x5b   :  { %587 = vmatpush.msra.mxu2 %v1595_v21 }
  0x5c   :  { %451 = vmatpush.msra.mxu0 %v1760_v46  ;;  %572 = vmatpush.msra.mxu1 %v1685_v35 }
  0x5d   :  { %588 = vmatpush.msra.mxu2 %v1614_v24 }
  0x5e   :  { %452 = vmatpush.msra.mxu0 %v1769_v47  ;;  %573 = vmatpush.msra.mxu1 %v1704_v38 }
  0x5f   :  { %589 = vmatpush.msra.mxu2 %v1633_v27 }
  0x60   :  { %453 = vmatpush.msra.mxu0 %v1778_v48  ;;  %574 = vmatpush.msra.mxu1 %v1723_v41 }
  0x61   :  { %590 = vmatpush.msra.mxu2 %v1652_v30 }
  0x63   :  { %591 = vmatpush.msra.mxu2 %v1671_v33 }
  0x65   :  { %592 = vmatpush.msra.mxu2 %v1690_v36 }
  0x67   :  { %593 = vmatpush.msra.mxu2 %v1709_v39 }
  0x69   :  { %594 = vmatpush.msra.mxu2 %v1728_v42 }
  0x9e   :  { %v94_v53 = vpop.f32.mrf.mxu0  ;;  %v114_v55 = vpop.f32.mrf.mxu1 }
  0x9f   :  { %v95_v56 = vadd.f32 %v94_v53, %v1892_v50  ;;  %v115_v57 = vadd.f32 %v114_v55, %v1894_v51 }
  0xa1   :  { %v137_v58 = vadd.f32 %v95_v56, %v26_v52  ;;  %v157_v59 = vadd.f32 %v115_v57, %v27_v54 }
  0xa3   :  { %v1316_v60 = vmul.f32 -1.442695, %v137_v58  ;;  %v1317_v61 = vmul.f32 -1.442695, %v157_v59 }
  0xa5   :  { %1360 = vpow2.f32 %v1316_v60 }
  0xa6   :  { %1362 = vpow2.f32 %v1317_v61 }
  0xab   :  { %v1361_v62 = vpop.eup %1360 }
  0xac   :  { %v1363_v63 = vpop.eup %1362  ;;  %v141_v0 = vadd.f32 1.0, %v1361_v62  ;;  %v134_v9 = vpop.f32.mrf.mxu2 }
  0xad   :  { %v161_v1 = vadd.f32 1.0, %v1363_v63  ;;  %v135_v17 = vadd.f32 %v134_v9, %v1904_v6 }
  0xae   :  { %1364 = vrcp.f32 %v141_v0  ;;  %v153_v10 = vand.u32 2147483648, %v141_v0  ;;  %v151_v14 = vand.u32 2147483647, %v141_v0  ;;  %vm147_vm1 = vweird.f32 %v141_v0 }
  0xaf   :  { %1366 = vrcp.f32 %v161_v1  ;;  %vm167_vm4 = vweird.f32 %v161_v1  ;;  %v173_v27 = vand.u32 2147483648, %v161_v1  ;;  %v171_v30 = vand.u32 2147483647, %v161_v1 }
  0xb0   :  { %v154_v20 = vor.u32 1.1754944e-38, %v153_v10  ;;  %vm152_vm3 = vcmp.eq.f32.partialorder %v151_v14, 8.507059e+37 }
  0xb1   :  { %v174_v35 = vor.u32 1.1754944e-38, %v173_v27  ;;  %vm172_vm7 = vcmp.eq.f32.partialorder %v171_v30, 8.507059e+37 }
  0xb4   :  { %v1365_v2 = vpop.eup %1364 }
  0xb5   :  { %v1367_v3 = vpop.eup %1366  ;;  %v143_v4 = vmul.f32 %v1365_v2, %v141_v0  ;;  %vm148_vm0 = vweird.f32 %v1365_v2 }
  0xb6   :  { %v163_v5 = vmul.f32 %v1367_v3, %v161_v1  ;;  %vm149_vm2 = vmor %vm147_vm1, %vm148_vm0  ;;  %vm168_vm5 = vweird.f32 %v1367_v3  ;;  %v1320_v1 = vld [vmem:[%s2505_s0 + $0x28] sm:$0xff] }
  0xb7   :  { %v144_v7 = vsub.f32 1.0, %v143_v4  ;;  %vm169_vm6 = vmor %vm167_vm4, %vm168_vm5 }
  0xb8   :  { %v164_v8 = vsub.f32 1.0, %v163_v5 }
  0xb9   :  { %v145_v11 = vmul.f32 %v1365_v2, %v144_v7 }
  0xba   :  { %v165_v15 = vmul.f32 %v1367_v3, %v164_v8 }
  0xbb   :  { %v146_v18 = vadd.f32 %v1365_v2, %v145_v11 }
  0xbc   :  { %v166_v26 = vadd.f32 %v1367_v3, %v165_v15 }
  0xbd   :  { %v150_v21 = vsel %vm149_vm2, %v1365_v2, %v146_v18 }
  0xbe   :  { %v155_v24 = vsel %vm152_vm3, %v154_v20, %v150_v21  ;;  %v170_v33 = vsel %vm169_vm6, %v1367_v3, %v166_v26  ;;  %v1324_v20 = vld [vmem:[%s2505_s0 + $0x30] sm:$0xff] }
  0xbf   :  { %v177_v29 = vmul.f32 %v155_v24, %v135_v17  ;;  %v175_v36 = vsel %vm172_vm7, %v174_v35, %v170_v33 }
  0xc0   :  { %v180_v38 = vsub.f32 1.0, %v175_v36  ;;  %v182_v42 = vmul.f32 %v175_v36, %v1737_v43 }
  0xc1   :  { %v178_v32 = vadd.f32 %v177_v29, %v28_v23  ;;  %v1325_v23 = vld [vmem:[%s2505_s0 + $0x38] sm:$0xff] }
  0xc3   :  { %1368 = vtanh.f32 %v178_v32 }
  0xc9   :  { %v1369_v39 = vpop.eup %1368 }
  0xca   :  { %v181_v41 = vmul.f32 %v1369_v39, %v180_v38 }
  0xcc   :  { %v1911_v49 = vadd.f32 %v182_v42, %v181_v41 }
  0xce   :  { %184 = vst [vmem:[%s2506_s4] sm:$0xff] %v1911_v49  ;;  %253 = vmatmul.f32.vlgmr.msra.gmra.mxu3 %v1911_v49  ;;  %273 = vmatmul.f32.vlgmr.msrb.gmra.mxu0 %v1911_v49 }
  0xcf   :  { %293 = vmatmul.f32.vlgmr.msrb.gmra.mxu1 %v1911_v49  ;;  %599 = vmatpush.msra.mxu3 %v1539_v12  ;;  %v1319_v12 = vld [vmem:[%s2505_s0 + $0x20] sm:$0xff] }
  0xd1   :  { %600 = vmatpush.msra.mxu3 %v1547_v13 }
  0xd3   :  { %601 = vmatpush.msra.mxu3 %v1566_v16 }
  0xd5   :  { %602 = vmatpush.msra.mxu3 %v1585_v19 }
  0xd7   :  { %603 = vmatpush.msra.mxu3 %v1604_v22 }
  0xd9   :  { %604 = vmatpush.msra.mxu3 %v1623_v25  ;;  %v1318_v25 = vld [vmem:[%s2505_s0 + $0x18] sm:$0xff] }
  0xdb   :  { %605 = vmatpush.msra.mxu3 %v1642_v28 }
  0xdd   :  { %606 = vmatpush.msra.mxu3 %v1661_v31 }
  0xdf   :  { %607 = vmatpush.msra.mxu3 %v1680_v34 }
  0xe1   :  { %608 = vmatpush.msra.mxu3 %v1699_v37 }
  0xe3   :  { %609 = vmatpush.msra.mxu3 %v1718_v40 }
  0xe5   :  { %610 = vmatpush.msra.mxu3 %v1743_v44 }
  0xe7   :  { %611 = vmatpush.msra.mxu3 %v1753_v45 }
  0xe9   :  { %612 = vmatpush.msra.mxu3 %v1760_v46 }
  0xeb   :  { %613 = vmatpush.msra.mxu3 %v1769_v47 }
  0xed   :  { %614 = vmatpush.msra.mxu3 %v1778_v48 }
 0x14b   :  { %v274_v13 = vpop.f32.mrf.mxu0 }
 0x14c   :  { %v275_v16 = vadd.f32 %v274_v13, %v1894_v51  ;;  %v294_v59 = vpop.f32.mrf.mxu1 }
 0x14d   :  { %v295_v62 = vadd.f32 %v294_v59, %v1904_v6 }
 0x14e   :  { %v317_v19 = vadd.f32 %v1319_v12, %v275_v16 }
 0x150   :  { %v1322_v22 = vmul.f32 -1.442695, %v317_v19 }
 0x151   :  { %v254_v28 = vpop.f32.mrf.mxu3 }
 0x152   :  { %1370 = vpow2.f32 %v1322_v22  ;;  %v255_v31 = vadd.f32 %v254_v28, %v1892_v50 }
 0x154   :  { %v297_v34 = vadd.f32 %v1318_v25, %v255_v31 }
 0x156   :  { %v1321_v37 = vmul.f32 -1.442695, %v297_v34 }
 0x158   :  { %v1371_v40 = vpop.eup %1370  ;;  %1372 = vpow2.f32 %v1321_v37 }
 0x159   :  { %v321_v43 = vadd.f32 1.0, %v1371_v40 }
 0x15b   :  { %1374 = vrcp.f32 %v321_v43  ;;  %v333_v3 = vand.u32 2147483648, %v321_v43  ;;  %vm327_vm13 = vweird.f32 %v321_v43  ;;  %v331_v5 = vand.u32 2147483647, %v321_v43 }
 0x15d   :  { %v334_v9 = vor.u32 1.1754944e-38, %v333_v3  ;;  %vm332_vm15 = vcmp.eq.f32.partialorder %v331_v5, 8.507059e+37  ;;  %v2004_v3 = vld [vmem:[%s2502_s1 + $0x160] sm:$0xff] }
 0x15e   :  { %v1373_v44 = vpop.eup %1372  ;;  %v2018_v5 = vld [vmem:[%s2502_s1 + $0x140] sm:$0xff] }
 0x15f   :  { %v301_v45 = vadd.f32 1.0, %v1373_v44 }
 0x161   :  { %1376 = vrcp.f32 %v301_v45  ;;  %v1375_v46 = vpop.eup %1374  ;;  %v313_v55 = vand.u32 2147483648, %v301_v45  ;;  %v311_v57 = vand.u32 2147483647, %v301_v45  ;;  %vm307_vm9 = vweird.f32 %v301_v45 }
 0x162   :  { %v323_v47 = vmul.f32 %v1375_v46, %v321_v43  ;;  %vm328_vm12 = vweird.f32 %v1375_v46 }
 0x163   :  { %v314_v61 = vor.u32 1.1754944e-38, %v313_v55  ;;  %vm312_vm11 = vcmp.eq.f32.partialorder %v311_v57, 8.507059e+37  ;;  %vm329_vm14 = vmor %vm327_vm13, %vm328_vm12 }
 0x164   :  { %v324_v53 = vsub.f32 1.0, %v323_v47 }
 0x166   :  { %v325_v58 = vmul.f32 %v1375_v46, %v324_v53 }
 0x167   :  { %v1377_v48 = vpop.eup %1376 }
 0x168   :  { %v303_v52 = vmul.f32 %v1377_v48, %v301_v45  ;;  %vm308_vm8 = vweird.f32 %v1377_v48  ;;  %v326_v2 = vadd.f32 %v1375_v46, %v325_v58  ;;  %v1326_v45 = vld [vmem:[%s2505_s0 + $0x40] sm:$0xff] }
 0x169   :  { %vm309_vm10 = vmor %vm307_vm9, %vm308_vm8 }
 0x16a   :  { %v304_v54 = vsub.f32 1.0, %v303_v52  ;;  %v330_v8 = vsel %vm329_vm14, %v1375_v46, %v326_v2  ;;  %v1999_v2 = vld [vmem:[%s2502_s1 + $0x158] sm:$0xff] }
 0x16b   :  { %v335_v10 = vsel %vm332_vm15, %v334_v9, %v330_v8  ;;  %v2032_v8 = vld [vmem:[%s2502_s1 + $0x120] sm:$0xff]  ;;  %v2037_v9 = vld [vmem:[%s2502_s1 + $0x128] sm:$0xff] }
 0x16c   :  { %v305_v56 = vmul.f32 %v1377_v48, %v304_v54  ;;  %v340_v11 = vsub.f32 1.0, %v335_v10  ;;  %v342_v17 = vmul.f32 %v335_v10, %v1911_v49  ;;  %v2042_v10 = vld [vmem:[%s2502_s1 + $0x130] sm:$0xff] }
 0x16e   :  { %v306_v60 = vadd.f32 %v1377_v48, %v305_v56 }
 0x170   :  { %v310_v63 = vsel %vm309_vm10, %v1377_v48, %v306_v60 }
 0x171   :  { %v315_v0 = vsel %vm312_vm11, %v314_v61, %v310_v63  ;;  %v1981_v63 = vld [vmem:[%s2502_s1 + $0x170] sm:$0xff] }
 0x172   :  { %v337_v4 = vmul.f32 %v315_v0, %v295_v62  ;;  %v1976_v62 = vld [vmem:[%s2502_s1 + $0x168] sm:$0xff]  ;;  %v1986_v0 = vld [vmem:[%s2502_s1 + $0x178] sm:$0xff]  ;;  %740 = vmatpush.msrb.mxu1 %v1981_v63 }
 0x173   :  { %720 = vmatpush.msrb.mxu0 %v1976_v62 }
 0x174   :  { %v338_v7 = vadd.f32 %v1320_v1, %v337_v4  ;;  %v1994_v1 = vld [vmem:[%s2502_s1 + $0x150] sm:$0xff]  ;;  %741 = vmatpush.msrb.mxu1 %v1999_v2  ;;  %v2013_v4 = vld [vmem:[%s2502_s1 + $0x138] sm:$0xff] }
 0x175   :  { %721 = vmatpush.msrb.mxu0 %v1994_v1 }
 0x176   :  { %1378 = vtanh.f32 %v338_v7  ;;  %v2023_v7 = vld [vmem:[%s2502_s1 + $0x148] sm:$0xff]  ;;  %742 = vmatpush.msrb.mxu1 %v2018_v5 }
 0x177   :  { %722 = vmatpush.msrb.mxu0 %v2013_v4 }
 0x178   :  { %743 = vmatpush.msrb.mxu1 %v2037_v9 }
 0x179   :  { %723 = vmatpush.msrb.mxu0 %v2032_v8 }
 0x17c   :  { %v1379_v14 = vpop.eup %1378 }
 0x17d   :  { %v341_v15 = vmul.f32 %v1379_v14, %v340_v11  ;;  %v2051_v11 = vld [vmem:[%s2502_s1 + $0x108] sm:$0xff]  ;;  %v2056_v14 = vld [vmem:[%s2502_s1 + $0x110] sm:$0xff] }
 0x17e   :  { %724 = vmatpush.msrb.mxu0 %v2051_v11  ;;  %744 = vmatpush.msrb.mxu1 %v2056_v14 }
 0x17f   :  { %v343_v18 = vadd.f32 %v342_v17, %v341_v15  ;;  %v2061_v15 = vld [vmem:[%s2502_s1 + $0x118] sm:$0xff]  ;;  %v2070_v17 = vld [vmem:[%s2502_s1 + $0xf0] sm:$0xff] }
 0x180   :  { %725 = vmatpush.msrb.mxu0 %v2070_v17 }
 0x181   :  { %1323 = vst [vmem:[%s2506_s4 + $0x8] sm:$0xff] %v343_v18  ;;  %414 = vmatmul.f32.vlgmr.msrb.gmra.mxu2 %v343_v18  ;;  %434 = vmatmul.f32.vlgmr.msrb.gmra.mxu3 %v343_v18 }
 0x182   :  { %454 = vmatmul.f32.vlgmr.msra.gmra.mxu0 %v343_v18  ;;  %760 = vmatpush.msrb.mxu2 %v1986_v0 }
 0x183   :  { %881 = vmatpush.msrb.mxu3 %v1976_v62 }
 0x184   :  { %761 = vmatpush.msrb.mxu2 %v2004_v3 }
 0x185   :  { %882 = vmatpush.msrb.mxu3 %v1994_v1 }
 0x186   :  { %762 = vmatpush.msrb.mxu2 %v2023_v7 }
 0x187   :  { %883 = vmatpush.msrb.mxu3 %v2013_v4 }
 0x188   :  { %763 = vmatpush.msrb.mxu2 %v2042_v10 }
 0x189   :  { %884 = vmatpush.msrb.mxu3 %v2032_v8 }
 0x18a   :  { %764 = vmatpush.msrb.mxu2 %v2061_v15 }
 0x18b   :  { %885 = vmatpush.msrb.mxu3 %v2051_v11 }
 0x18d   :  { %886 = vmatpush.msrb.mxu3 %v2070_v17 }
 0x1ff   :  { %v455_v28 = vpop.f32.mrf.mxu0 }
 0x200   :  { %v456_v40 = vadd.f32 %v455_v28, %v1904_v6 }
 0x204   :  { %v415_v21 = vpop.f32.mrf.mxu2  ;;  %v435_v24 = vpop.f32.mrf.mxu3 }
 0x205   :  { %v416_v26 = vadd.f32 %v415_v21, %v1892_v50  ;;  %v436_v27 = vadd.f32 %v435_v24, %v1894_v51  ;;  %v2089_v21 = vld [vmem:[%s2502_s1 + $0xd8] sm:$0xff]  ;;  %v2099_v24 = vld [vmem:[%s2502_s1 + $0xe8] sm:$0xff] }
 0x206   :  { %726 = vmatpush.msrb.mxu0 %v2089_v21  ;;  %887 = vmatpush.msrb.mxu3 %v2089_v21 }
 0x207   :  { %v458_v29 = vadd.f32 %v1324_v20, %v416_v26  ;;  %v478_v30 = vadd.f32 %v1325_v23, %v436_v27  ;;  %v2080_v20 = vld [vmem:[%s2502_s1 + $0x100] sm:$0xff]  ;;  %v2113_v27 = vld [vmem:[%s2502_s1 + $0xc8] sm:$0xff] }
 0x208   :  { %765 = vmatpush.msrb.mxu2 %v2080_v20  ;;  %v2094_v23 = vld [vmem:[%s2502_s1 + $0xe0] sm:$0xff] }
 0x209   :  { %v1327_v32 = vmul.f32 -1.442695, %v458_v29  ;;  %v1328_v33 = vmul.f32 -1.442695, %v478_v30  ;;  %v2108_v26 = vld [vmem:[%s2502_s1 + $0xc0] sm:$0xff]  ;;  %v2118_v29 = vld [vmem:[%s2502_s1 + $0xd0] sm:$0xff] }
 0x20a   :  { %766 = vmatpush.msrb.mxu2 %v2099_v24  ;;  %v1330_v30 = vld [vmem:[%s2505_s0 + $0x48] sm:$0xff]  ;;  %727 = vmatpush.msrb.mxu0 %v2108_v26 }
 0x20b   :  { %1380 = vpow2.f32 %v1327_v32  ;;  %888 = vmatpush.msrb.mxu3 %v2108_v26 }
 0x20c   :  { %1382 = vpow2.f32 %v1328_v33  ;;  %767 = vmatpush.msrb.mxu2 %v2118_v29 }
 0x211   :  { %v1381_v35 = vpop.eup %1380 }
 0x212   :  { %v1383_v36 = vpop.eup %1382  ;;  %v462_v38 = vadd.f32 1.0, %v1381_v35  ;;  %v2131_v35 = vld [vmem:[%s2502_s1 + $0xa8] sm:$0xff] }
 0x213   :  { %v482_v39 = vadd.f32 1.0, %v1383_v36  ;;  %v2136_v36 = vld [vmem:[%s2502_s1 + $0xb0] sm:$0xff]  ;;  %728 = vmatpush.msrb.mxu0 %v2131_v35  ;;  %889 = vmatpush.msrb.mxu3 %v2131_v35 }
 0x214   :  { %1384 = vrcp.f32 %v462_v38  ;;  %v474_v16 = vand.u32 2147483648, %v462_v38  ;;  %v472_v25 = vand.u32 2147483647, %v462_v38  ;;  %vm468_vm1 = vweird.f32 %v462_v38 }
 0x215   :  { %1386 = vrcp.f32 %v482_v39  ;;  %v494_v48 = vand.u32 2147483648, %v482_v39  ;;  %vm488_vm5 = vweird.f32 %v482_v39  ;;  %v492_v52 = vand.u32 2147483647, %v482_v39 }
 0x216   :  { %v475_v37 = vor.u32 1.1754944e-38, %v474_v16  ;;  %vm473_vm3 = vcmp.eq.f32.partialorder %v472_v25, 8.507059e+37  ;;  %v2174_v16 = vld [vmem:[%s2502_s1 + $0x80] sm:$0xff] }
 0x217   :  { %v495_v55 = vor.u32 1.1754944e-38, %v494_v48  ;;  %vm493_vm7 = vcmp.eq.f32.partialorder %v492_v52, 8.507059e+37  ;;  %v2235_v48 = vld [vmem:[%s2502_s1 + $0x38] sm:$0xff]  ;;  %v2240_v52 = vld [vmem:[%s2502_s1 + $0x40] sm:$0xff] }
 0x21a   :  { %v1385_v41 = vpop.eup %1384 }
 0x21b   :  { %v1387_v42 = vpop.eup %1386  ;;  %v464_v49 = vmul.f32 %v1385_v41, %v462_v38  ;;  %vm469_vm0 = vweird.f32 %v1385_v41  ;;  %v2144_v38 = vld [vmem:[%s2502_s1 + $0xb8] sm:$0xff] }
 0x21c   :  { %v484_v12 = vmul.f32 %v1387_v42, %v482_v39  ;;  %vm470_vm2 = vmor %vm468_vm1, %vm469_vm0  ;;  %vm489_vm4 = vweird.f32 %v1387_v42  ;;  %768 = vmatpush.msrb.mxu2 %v2144_v38 }
 0x21d   :  { %v465_v13 = vsub.f32 1.0, %v464_v49  ;;  %vm490_vm6 = vmor %vm488_vm5, %vm489_vm4  ;;  %v2160_v49 = vld [vmem:[%s2502_s1 + $0xa0] sm:$0xff] }
 0x21e   :  { %v485_v19 = vsub.f32 1.0, %v484_v12  ;;  %769 = vmatpush.msrb.mxu2 %v2160_v49 }
 0x21f   :  { %v466_v22 = vmul.f32 %v1385_v41, %v465_v13  ;;  %v2169_v13 = vld [vmem:[%s2502_s1 + $0x78] sm:$0xff] }
 0x220   :  { %v486_v31 = vmul.f32 %v1387_v42, %v485_v19  ;;  %v2179_v19 = vld [vmem:[%s2502_s1 + $0x88] sm:$0xff] }
 0x221   :  { %v467_v34 = vadd.f32 %v1385_v41, %v466_v22  ;;  %v1331_v22 = vld [vmem:[%s2505_s0 + $0x50] sm:$0xff]  ;;  %770 = vmatpush.msrb.mxu2 %v2179_v19 }
 0x222   :  { %v487_v46 = vadd.f32 %v1387_v42, %v486_v31  ;;  %v2192_v31 = vld [vmem:[%s2502_s1 + $0x60] sm:$0xff] }
 0x223   :  { %v471_v43 = vsel %vm470_vm2, %v1385_v41, %v467_v34  ;;  %v2150_v41 = vld [vmem:[%s2502_s1 + $0x90] sm:$0xff]  ;;  %v2197_v34 = vld [vmem:[%s2502_s1 + $0x68] sm:$0xff] }
 0x224   :  { %v476_v44 = vsel %vm473_vm3, %v475_v37, %v471_v43  ;;  %v491_v54 = vsel %vm490_vm6, %v1387_v42, %v487_v46  ;;  %v2155_v42 = vld [vmem:[%s2502_s1 + $0x98] sm:$0xff]  ;;  %729 = vmatpush.msrb.mxu0 %v2150_v41  ;;  %890 = vmatpush.msrb.mxu3 %v2150_v41  ;;  %v2202_v37 = vld [vmem:[%s2502_s1 + $0x70] sm:$0xff]  ;;  %v2211_v43 = vld [vmem:[%s2502_s1 + $0x48] sm:$0xff] }
 0x225   :  { %v498_v47 = vmul.f32 %v476_v44, %v456_v40  ;;  %v496_v56 = vsel %vm493_vm7, %v495_v55, %v491_v54  ;;  %771 = vmatpush.msrb.mxu2 %v2202_v37  ;;  %v2216_v44 = vld [vmem:[%s2502_s1 + $0x50] sm:$0xff]  ;;  %v2253_v54 = vld [vmem:[%s2502_s1 + $0x20] sm:$0xff]  ;;  %v2258_v55 = vld [vmem:[%s2502_s1 + $0x28] sm:$0xff] }
 0x226   :  { %v501_v57 = vsub.f32 1.0, %v496_v56  ;;  %v503_v60 = vmul.f32 %v496_v56, %v343_v18  ;;  %v2075_v18 = vld [vmem:[%s2502_s1 + $0xf8] sm:$0xff]  ;;  %730 = vmatpush.msrb.mxu0 %v2169_v13  ;;  %891 = vmatpush.msrb.mxu3 %v2169_v13 }
 0x227   :  { %v499_v53 = vadd.f32 %v1326_v45, %v498_v47  ;;  %745 = vmatpush.msrb.mxu1 %v2075_v18  ;;  %v2221_v45 = vld [vmem:[%s2502_s1 + $0x58] sm:$0xff]  ;;  %v2230_v47 = vld [vmem:[%s2502_s1 + $0x30] sm:$0xff] }
 0x228   :  { %731 = vmatpush.msrb.mxu0 %v2192_v31  ;;  %892 = vmatpush.msrb.mxu3 %v2192_v31 }
 0x229   :  { %1388 = vtanh.f32 %v499_v53  ;;  %746 = vmatpush.msrb.mxu1 %v2094_v23  ;;  %772 = vmatpush.msrb.mxu2 %v2221_v45  ;;  %v2248_v53 = vld [vmem:[%s2502_s1 + $0x18] sm:$0xff] }
 0x22a   :  { %732 = vmatpush.msrb.mxu0 %v2211_v43  ;;  %893 = vmatpush.msrb.mxu3 %v2211_v43 }
 0x22b   :  { %747 = vmatpush.msrb.mxu1 %v2113_v27  ;;  %773 = vmatpush.msrb.mxu2 %v2240_v52 }
 0x22c   :  { %733 = vmatpush.msrb.mxu0 %v2230_v47  ;;  %894 = vmatpush.msrb.mxu3 %v2230_v47 }
 0x22d   :  { %748 = vmatpush.msrb.mxu1 %v2136_v36  ;;  %774 = vmatpush.msrb.mxu2 %v2258_v55 }
 0x22e   :  { %734 = vmatpush.msrb.mxu0 %v2248_v53  ;;  %895 = vmatpush.msrb.mxu3 %v2248_v53 }
 0x22f   :  { %v1389_v58 = vpop.eup %1388  ;;  %749 = vmatpush.msrb.mxu1 %v2155_v42 }
 0x230   :  { %v502_v59 = vmul.f32 %v1389_v58, %v501_v57  ;;  %v2264_v57 = vld [vmem:[%s2502_s1] sm:$0xff]  ;;  %v2269_v58 = vld [vmem:[%s2502_s1 + $0x8] sm:$0xff] }
 0x231   :  { %750 = vmatpush.msrb.mxu1 %v2174_v16  ;;  %735 = vmatpush.msrb.mxu0 %v2264_v57 }
 0x232   :  { %v1964_v61 = vadd.f32 %v503_v60, %v502_v59  ;;  %v2277_v60 = vld [vmem:[%s2502_s1 + $0x10] sm:$0xff]  ;;  %896 = vmatpush.msrb.mxu3 %v2264_v57 }
 0x233   :  { %751 = vmatpush.msrb.mxu1 %v2197_v34  ;;  %775 = vmatpush.msrb.mxu2 %v2277_v60 }
 0x234   :  { %1329 = vst [vmem:[%s2506_s4 + $0x10] sm:$0xff] %v1964_v61  ;;  %575 = vmatmul.f32.vlgmr.msra.gmra.mxu1 %v1964_v61  ;;  %595 = vmatmul.f32.vlgmr.msra.gmra.mxu2 %v1964_v61 }
 0x235   :  { %615 = vmatmul.f32.vlgmr.msra.gmra.mxu3 %v1964_v61  ;;  %752 = vmatpush.msrb.mxu1 %v2216_v44 }
 0x236   :  { %901 = vmatpush.msra.mxu0 %v1981_v63  ;;  %1042 = vmatpush.msra.mxu2 %v1976_v62 }
 0x237   :  { %753 = vmatpush.msrb.mxu1 %v2235_v48  ;;  %1062 = vmatpush.msra.mxu3 %v1981_v63 }
 0x238   :  { %902 = vmatpush.msra.mxu0 %v1999_v2  ;;  %1043 = vmatpush.msra.mxu2 %v1994_v1 }
 0x239   :  { %754 = vmatpush.msrb.mxu1 %v2253_v54  ;;  %1063 = vmatpush.msra.mxu3 %v1999_v2 }
 0x23a   :  { %903 = vmatpush.msra.mxu0 %v2018_v5  ;;  %1044 = vmatpush.msra.mxu2 %v2013_v4 }
 0x23b   :  { %755 = vmatpush.msrb.mxu1 %v2269_v58  ;;  %1064 = vmatpush.msra.mxu3 %v2018_v5 }
 0x23c   :  { %904 = vmatpush.msra.mxu0 %v2037_v9  ;;  %1045 = vmatpush.msra.mxu2 %v2032_v8 }
 0x23d   :  { %921 = vmatpush.msra.mxu1 %v1986_v0  ;;  %1065 = vmatpush.msra.mxu3 %v2037_v9 }
 0x23e   :  { %905 = vmatpush.msra.mxu0 %v2056_v14  ;;  %1046 = vmatpush.msra.mxu2 %v2051_v11 }
 0x23f   :  { %922 = vmatpush.msra.mxu1 %v2004_v3  ;;  %1066 = vmatpush.msra.mxu3 %v2056_v14 }
 0x240   :  { %906 = vmatpush.msra.mxu0 %v2075_v18  ;;  %1047 = vmatpush.msra.mxu2 %v2070_v17 }
 0x241   :  { %923 = vmatpush.msra.mxu1 %v2023_v7  ;;  %1067 = vmatpush.msra.mxu3 %v2075_v18 }
 0x242   :  { %907 = vmatpush.msra.mxu0 %v2094_v23  ;;  %1048 = vmatpush.msra.mxu2 %v2089_v21 }
 0x243   :  { %924 = vmatpush.msra.mxu1 %v2042_v10  ;;  %1068 = vmatpush.msra.mxu3 %v2094_v23 }
 0x244   :  { %908 = vmatpush.msra.mxu0 %v2113_v27  ;;  %1049 = vmatpush.msra.mxu2 %v2108_v26 }
 0x245   :  { %925 = vmatpush.msra.mxu1 %v2061_v15  ;;  %1069 = vmatpush.msra.mxu3 %v2113_v27 }
 0x246   :  { %909 = vmatpush.msra.mxu0 %v2136_v36  ;;  %1050 = vmatpush.msra.mxu2 %v2131_v35 }
 0x247   :  { %926 = vmatpush.msra.mxu1 %v2080_v20  ;;  %1070 = vmatpush.msra.mxu3 %v2136_v36 }
 0x248   :  { %910 = vmatpush.msra.mxu0 %v2155_v42  ;;  %1051 = vmatpush.msra.mxu2 %v2150_v41 }
 0x249   :  { %927 = vmatpush.msra.mxu1 %v2099_v24  ;;  %1071 = vmatpush.msra.mxu3 %v2155_v42 }
 0x24a   :  { %911 = vmatpush.msra.mxu0 %v2174_v16  ;;  %1052 = vmatpush.msra.mxu2 %v2169_v13 }
 0x24b   :  { %928 = vmatpush.msra.mxu1 %v2118_v29  ;;  %1072 = vmatpush.msra.mxu3 %v2174_v16 }
 0x24c   :  { %912 = vmatpush.msra.mxu0 %v2197_v34  ;;  %1053 = vmatpush.msra.mxu2 %v2192_v31 }
 0x24d   :  { %929 = vmatpush.msra.mxu1 %v2144_v38  ;;  %1073 = vmatpush.msra.mxu3 %v2197_v34 }
 0x24e   :  { %913 = vmatpush.msra.mxu0 %v2216_v44  ;;  %1054 = vmatpush.msra.mxu2 %v2211_v43 }
 0x24f   :  { %930 = vmatpush.msra.mxu1 %v2160_v49  ;;  %1074 = vmatpush.msra.mxu3 %v2216_v44 }
 0x250   :  { %914 = vmatpush.msra.mxu0 %v2235_v48  ;;  %1055 = vmatpush.msra.mxu2 %v2230_v47 }
 0x251   :  { %931 = vmatpush.msra.mxu1 %v2179_v19  ;;  %1075 = vmatpush.msra.mxu3 %v2235_v48 }
 0x252   :  { %915 = vmatpush.msra.mxu0 %v2253_v54  ;;  %1056 = vmatpush.msra.mxu2 %v2248_v53 }
 0x253   :  { %932 = vmatpush.msra.mxu1 %v2202_v37  ;;  %1076 = vmatpush.msra.mxu3 %v2253_v54 }
 0x254   :  { %916 = vmatpush.msra.mxu0 %v2269_v58  ;;  %1057 = vmatpush.msra.mxu2 %v2264_v57 }
 0x255   :  { %933 = vmatpush.msra.mxu1 %v2221_v45  ;;  %1077 = vmatpush.msra.mxu3 %v2269_v58 }
 0x257   :  { %934 = vmatpush.msra.mxu1 %v2240_v52 }
 0x259   :  { %935 = vmatpush.msra.mxu1 %v2258_v55 }
 0x25b   :  { %936 = vmatpush.msra.mxu1 %v2277_v60 }
 0x2b1   :  { %v576_v32 = vpop.f32.mrf.mxu1 }
 0x2b2   :  { %v577_v33 = vadd.f32 %v576_v32, %v1892_v50 }
 0x2b4   :  { %v619_v39 = vadd.f32 %v1330_v30, %v577_v33 }
 0x2b6   :  { %v1333_v12 = vmul.f32 -1.442695, %v619_v39 }
 0x2b7   :  { %v596_v25 = vpop.f32.mrf.mxu2 }
 0x2b8   :  { %1390 = vpow2.f32 %v1333_v12  ;;  %v597_v28 = vadd.f32 %v596_v25, %v1894_v51 }
 0x2ba   :  { %v639_v40 = vadd.f32 %v1331_v22, %v597_v28 }
 0x2bc   :  { %v1334_v46 = vmul.f32 -1.442695, %v639_v40 }
 0x2be   :  { %v1391_v56 = vpop.eup %1390  ;;  %1392 = vpow2.f32 %v1334_v46  ;;  %v616_v46 = vpop.f32.mrf.mxu3 }
 0x2bf   :  { %v623_v59 = vadd.f32 1.0, %v1391_v56  ;;  %v617_v51 = vadd.f32 %v616_v46, %v1904_v6 }
 0x2c1   :  { %1394 = vrcp.f32 %v623_v59  ;;  %v635_v22 = vand.u32 2147483648, %v623_v59  ;;  %v633_v28 = vand.u32 2147483647, %v623_v59  ;;  %vm629_vm9 = vweird.f32 %v623_v59 }
 0x2c3   :  { %vm634_vm11 = vcmp.eq.f32.partialorder %v633_v28, 8.507059e+37 }
 0x2c4   :  { %v1393_v30 = vpop.eup %1392 }
 0x2c5   :  { %v2289_v32 = vadd.f32 1.0, %v1393_v30 }
 0x2c7   :  { %v1395_v33 = vpop.eup %1394  ;;  %1396 = vrcp.f32 %v2289_v32  ;;  %vm649_vm13 = vweird.f32 %v2289_v32 }
 0x2c8   :  { %v625_v39 = vmul.f32 %v1395_v33, %v623_v59  ;;  %vm630_vm8 = vweird.f32 %v1395_v33  ;;  %v1332_v59 = vld [vmem:[%s2505_s0 + $0x58] sm:$0xff] }
 0x2c9   :  { %vm631_vm10 = vmor %vm629_vm9, %vm630_vm8 }
 0x2ca   :  { %v626_v12 = vsub.f32 1.0, %v625_v39  ;;  %v636_v39 = vor.u32 1.1754944e-38, %v635_v22 }
 0x2cc   :  { %v627_v25 = vmul.f32 %v1395_v33, %v626_v12 }
 0x2cd   :  { %v1397_v40 = vpop.eup %1396 }
 0x2ce   :  { %v645_v56 = vmul.f32 %v1397_v40, %v2289_v32  ;;  %v628_v30 = vadd.f32 %v1395_v33, %v627_v25  ;;  %vm650_vm12 = vweird.f32 %v1397_v40 }
 0x2cf   :  { %vm651_vm14 = vmor %vm649_vm13, %vm650_vm12 }
 0x2d0   :  { %v646_v12 = vsub.f32 1.0, %v645_v56  ;;  %v632_v50 = vsel %vm631_vm10, %v1395_v33, %v628_v30  ;;  %v655_v56 = vand.u32 2147483648, %v2289_v32  ;;  %v653_v33 = vand.u32 2147483647, %v2289_v32 }
 0x2d1   :  { %v637_v25 = vsel %vm634_vm11, %v636_v39, %v632_v50 }
 0x2d2   :  { %v647_v22 = vmul.f32 %v1397_v40, %v646_v12  ;;  %v659_v46 = vmul.f32 %v637_v25, %v617_v51  ;;  %v656_v51 = vor.u32 1.1754944e-38, %v655_v56  ;;  %vm654_vm15 = vcmp.eq.f32.partialorder %v653_v33, 8.507059e+37 }
 0x2d4   :  { %v648_v50 = vadd.f32 %v1397_v40, %v647_v22  ;;  %v660_v28 = vadd.f32 %v1332_v59, %v659_v46 }
 0x2d6   :  { %v652_v30 = vsel %vm651_vm14, %v1397_v40, %v648_v50  ;;  %1398 = vtanh.f32 %v660_v28 }
 0x2d7   :  { %v657_v32 = vsel %vm654_vm15, %v656_v51, %v652_v30 }
 0x2d8   :  { %v662_v40 = vsub.f32 1.0, %v657_v32  ;;  %v664_v59 = vmul.f32 %v657_v32, %v1964_v61  ;;  %v1336_v61 = vld [vmem:[%s2505_s0 + $0x60] sm:$0xff] }
 0x2dc   :  { %v1399_v39 = vpop.eup %1398 }
 0x2dd   :  { %v663_v12 = vmul.f32 %v1399_v39, %v662_v40 }
 0x2df   :  { %v2353_v25 = vadd.f32 %v664_v59, %v663_v12 }
 0x2e1   :  { %1335 = vst [vmem:[%s2506_s4 + $0x18] sm:$0xff] %v2353_v25  ;;  %736 = vmatmul.f32.vlgmr.msrb.gmra.mxu0 %v2353_v25  ;;  %756 = vmatmul.f32.vlgmr.msrb.gmra.mxu1 %v2353_v25 }
 0x2e2   :  { %776 = vmatmul.f32.vlgmr.msrb.gmra.mxu2 %v2353_v25  ;;  %1082 = vmatpush.msrb.mxu0 %v1986_v0 }
 0x2e3   :  { %1203 = vmatpush.msrb.mxu1 %v1976_v62  ;;  %1223 = vmatpush.msrb.mxu2 %v1981_v63  ;;  %v1337_v63 = vld [vmem:[%s2505_s0 + $0x68] sm:$0xff] }
 0x2e4   :  { %1083 = vmatpush.msrb.mxu0 %v2004_v3 }
 0x2e5   :  { %1204 = vmatpush.msrb.mxu1 %v1994_v1  ;;  %1224 = vmatpush.msrb.mxu2 %v1999_v2  ;;  %v2513_v2 = vld [vmem:[#allocation2_spill] sm:$0xff] }
 0x2e6   :  { %1084 = vmatpush.msrb.mxu0 %v2023_v7 }
 0x2e7   :  { %1205 = vmatpush.msrb.mxu1 %v2013_v4  ;;  %1225 = vmatpush.msrb.mxu2 %v2018_v5  ;;  %v2514_v5 = vld [vmem:[#allocation3_spill] sm:$0xff] }
 0x2e8   :  { %1085 = vmatpush.msrb.mxu0 %v2042_v10 }
 0x2e9   :  { %1206 = vmatpush.msrb.mxu1 %v2032_v8  ;;  %1226 = vmatpush.msrb.mxu2 %v2037_v9 }
 0x2ea   :  { %1086 = vmatpush.msrb.mxu0 %v2061_v15 }
 0x2eb   :  { %1207 = vmatpush.msrb.mxu1 %v2051_v11  ;;  %1227 = vmatpush.msrb.mxu2 %v2056_v14 }
 0x2ec   :  { %1087 = vmatpush.msrb.mxu0 %v2080_v20 }
 0x2ed   :  { %1208 = vmatpush.msrb.mxu1 %v2070_v17  ;;  %1228 = vmatpush.msrb.mxu2 %v2075_v18 }
 0x2ee   :  { %1088 = vmatpush.msrb.mxu0 %v2099_v24 }
 0x2ef   :  { %1209 = vmatpush.msrb.mxu1 %v2089_v21  ;;  %1229 = vmatpush.msrb.mxu2 %v2094_v23 }
 0x2f0   :  { %1089 = vmatpush.msrb.mxu0 %v2118_v29 }
 0x2f1   :  { %1210 = vmatpush.msrb.mxu1 %v2108_v26  ;;  %1230 = vmatpush.msrb.mxu2 %v2113_v27 }
 0x2f2   :  { %1090 = vmatpush.msrb.mxu0 %v2144_v38 }
 0x2f3   :  { %1211 = vmatpush.msrb.mxu1 %v2131_v35  ;;  %1231 = vmatpush.msrb.mxu2 %v2136_v36 }
 0x2f4   :  { %1091 = vmatpush.msrb.mxu0 %v2160_v49 }
 0x2f5   :  { %1212 = vmatpush.msrb.mxu1 %v2150_v41  ;;  %1232 = vmatpush.msrb.mxu2 %v2155_v42 }
 0x2f6   :  { %1092 = vmatpush.msrb.mxu0 %v2179_v19 }
 0x2f7   :  { %1213 = vmatpush.msrb.mxu1 %v2169_v13  ;;  %1233 = vmatpush.msrb.mxu2 %v2174_v16 }
 0x2f8   :  { %1093 = vmatpush.msrb.mxu0 %v2202_v37 }
 0x2f9   :  { %1214 = vmatpush.msrb.mxu1 %v2192_v31  ;;  %1234 = vmatpush.msrb.mxu2 %v2197_v34 }
 0x2fa   :  { %1094 = vmatpush.msrb.mxu0 %v2221_v45 }
 0x2fb   :  { %1215 = vmatpush.msrb.mxu1 %v2211_v43  ;;  %1235 = vmatpush.msrb.mxu2 %v2216_v44 }
 0x2fc   :  { %1095 = vmatpush.msrb.mxu0 %v2240_v52 }
 0x2fd   :  { %1216 = vmatpush.msrb.mxu1 %v2230_v47  ;;  %1236 = vmatpush.msrb.mxu2 %v2235_v48 }
 0x2fe   :  { %1096 = vmatpush.msrb.mxu0 %v2258_v55 }
 0x2ff   :  { %1217 = vmatpush.msrb.mxu1 %v2248_v53  ;;  %1237 = vmatpush.msrb.mxu2 %v2253_v54 }
 0x300   :  { %1097 = vmatpush.msrb.mxu0 %v2277_v60 }
 0x301   :  { %1218 = vmatpush.msrb.mxu1 %v2264_v57  ;;  %1238 = vmatpush.msrb.mxu2 %v2269_v58  ;;  %v1338_v57 = vld [vmem:[%s2505_s0 + $0x70] sm:$0xff] }
 0x35e   :  { %v737_v62 = vpop.f32.mrf.mxu0  ;;  %v757_v1 = vpop.f32.mrf.mxu1 }
 0x35f   :  { %v738_v4 = vadd.f32 %v737_v62, %v2513_v2  ;;  %v758_v8 = vadd.f32 %v757_v1, %v2514_v5 }
 0x361   :  { %v780_v9 = vadd.f32 %v1336_v61, %v738_v4  ;;  %v800_v11 = vadd.f32 %v1337_v63, %v758_v8 }
 0x363   :  { %v1339_v14 = vmul.f32 -1.442695, %v780_v9  ;;  %v1340_v17 = vmul.f32 -1.442695, %v800_v11 }
 0x365   :  { %1400 = vpow2.f32 %v1339_v14  ;;  %v777_v44 = vpop.f32.mrf.mxu2 }
 0x366   :  { %1402 = vpow2.f32 %v1340_v17  ;;  %v778_v53 = vadd.f32 %v777_v44, %v1904_v6 }
 0x36b   :  { %v1401_v18 = vpop.eup %1400 }
 0x36c   :  { %v1403_v21 = vpop.eup %1402  ;;  %v784_v23 = vadd.f32 1.0, %v1401_v18 }
 0x36d   :  { %v804_v26 = vadd.f32 1.0, %v1403_v21 }
 0x36e   :  { %1404 = vrcp.f32 %v784_v23  ;;  %v796_v16 = vand.u32 2147483648, %v784_v23  ;;  %v794_v34 = vand.u32 2147483647, %v784_v23  ;;  %vm790_vm1 = vweird.f32 %v784_v23 }
 0x36f   :  { %1406 = vrcp.f32 %v804_v26  ;;  %v816_v56 = vand.u32 2147483648, %v804_v26  ;;  %vm810_vm5 = vweird.f32 %v804_v26  ;;  %v814_v33 = vand.u32 2147483647, %v804_v26 }
 0x370   :  { %v797_v48 = vor.u32 1.1754944e-38, %v796_v16  ;;  %vm795_vm3 = vcmp.eq.f32.partialorder %v794_v34, 8.507059e+37 }
 0x371   :  { %v817_v51 = vor.u32 1.1754944e-38, %v816_v56  ;;  %vm815_vm7 = vcmp.eq.f32.partialorder %v814_v33, 8.507059e+37 }
 0x374   :  { %v1405_v27 = vpop.eup %1404 }
 0x375   :  { %v1407_v35 = vpop.eup %1406  ;;  %v786_v36 = vmul.f32 %v1405_v27, %v784_v23  ;;  %vm791_vm0 = vweird.f32 %v1405_v27 }
 0x376   :  { %v806_v41 = vmul.f32 %v1407_v35, %v804_v26  ;;  %vm792_vm2 = vmor %vm790_vm1, %vm791_vm0  ;;  %vm811_vm4 = vweird.f32 %v1407_v35  ;;  %v1344_v26 = vld [vmem:[%s2505_s0 + $0x88] sm:$0xff] }
 0x377   :  { %v787_v42 = vsub.f32 1.0, %v786_v36  ;;  %vm812_vm6 = vmor %vm810_vm5, %vm811_vm4 }
 0x378   :  { %v807_v13 = vsub.f32 1.0, %v806_v41 }
 0x379   :  { %v788_v31 = vmul.f32 %v1405_v27, %v787_v42 }
 0x37a   :  { %v808_v43 = vmul.f32 %v1407_v35, %v807_v13 }
 0x37b   :  { %v789_v47 = vadd.f32 %v1405_v27, %v788_v31 }
 0x37c   :  { %v809_v22 = vadd.f32 %v1407_v35, %v808_v43 }
 0x37d   :  { %v793_v54 = vsel %vm792_vm2, %v1405_v27, %v789_v47 }
 0x37e   :  { %v798_v58 = vsel %vm795_vm3, %v797_v48, %v793_v54  ;;  %v813_v28 = vsel %vm812_vm6, %v1407_v35, %v809_v22 }
 0x37f   :  { %v820_v46 = vmul.f32 %v798_v58, %v778_v53  ;;  %v818_v30 = vsel %vm815_vm7, %v817_v51, %v813_v28  ;;  %v1348_v53 = vld [vmem:[%s2505_s0 + $0x90] sm:$0xff] }
 0x380   :  { %v823_v32 = vsub.f32 1.0, %v818_v30  ;;  %v825_v12 = vmul.f32 %v818_v30, %v2353_v25 }
 0x381   :  { %v821_v50 = vadd.f32 %v1338_v57, %v820_v46  ;;  %v1349_v57 = vld [vmem:[%s2505_s0 + $0x98] sm:$0xff] }
 0x383   :  { %1408 = vtanh.f32 %v821_v50 }
 0x389   :  { %v1409_v40 = vpop.eup %1408 }
 0x38a   :  { %v824_v39 = vmul.f32 %v1409_v40, %v823_v32 }
 0x38c   :  { %v2431_v59 = vadd.f32 %v825_v12, %v824_v39 }
 0x38e   :  { %1341 = vst [vmem:[%s2506_s4 + $0x20] sm:$0xff] %v2431_v59  ;;  %897 = vmatmul.f32.vlgmr.msrb.gmra.mxu3 %v2431_v59  ;;  %917 = vmatmul.f32.vlgmr.msra.gmra.mxu0 %v2431_v59 }
 0x38f   :  { %937 = vmatmul.f32.vlgmr.msra.gmra.mxu1 %v2431_v59  ;;  %1243 = vmatpush.msrb.mxu3 %v1986_v0  ;;  %v1343_v0 = vld [vmem:[%s2505_s0 + $0x80] sm:$0xff] }
 0x391   :  { %1244 = vmatpush.msrb.mxu3 %v2004_v3 }
 0x393   :  { %1245 = vmatpush.msrb.mxu3 %v2023_v7 }
 0x395   :  { %1246 = vmatpush.msrb.mxu3 %v2042_v10 }
 0x397   :  { %1247 = vmatpush.msrb.mxu3 %v2061_v15 }
 0x399   :  { %1248 = vmatpush.msrb.mxu3 %v2080_v20  ;;  %v1342_v20 = vld [vmem:[%s2505_s0 + $0x78] sm:$0xff] }
 0x39b   :  { %1249 = vmatpush.msrb.mxu3 %v2099_v24 }
 0x39d   :  { %1250 = vmatpush.msrb.mxu3 %v2118_v29 }
 0x39f   :  { %1251 = vmatpush.msrb.mxu3 %v2144_v38 }
 0x3a1   :  { %1252 = vmatpush.msrb.mxu3 %v2160_v49 }
 0x3a3   :  { %1253 = vmatpush.msrb.mxu3 %v2179_v19 }
 0x3a5   :  { %1254 = vmatpush.msrb.mxu3 %v2202_v37 }
 0x3a7   :  { %1255 = vmatpush.msrb.mxu3 %v2221_v45 }
 0x3a9   :  { %1256 = vmatpush.msrb.mxu3 %v2240_v52 }
 0x3ab   :  { %1257 = vmatpush.msrb.mxu3 %v2258_v55 }
 0x3ad   :  { %1258 = vmatpush.msrb.mxu3 %v2277_v60 }
 0x40b   :  { %v918_v3 = vpop.f32.mrf.mxu0 }
 0x40c   :  { %v919_v7 = vadd.f32 %v918_v3, %v2514_v5  ;;  %v938_v11 = vpop.f32.mrf.mxu1 }
 0x40d   :  { %v939_v18 = vadd.f32 %v938_v11, %v1904_v6 }
 0x40e   :  { %v961_v10 = vadd.f32 %v1343_v0, %v919_v7 }
 0x410   :  { %v1346_v15 = vmul.f32 -1.442695, %v961_v10 }
 0x411   :  { %v898_v24 = vpop.f32.mrf.mxu3 }
 0x412   :  { %1410 = vpow2.f32 %v1346_v15  ;;  %v899_v29 = vadd.f32 %v898_v24, %v2513_v2 }
 0x414   :  { %v941_v38 = vadd.f32 %v1342_v20, %v899_v29 }
 0x416   :  { %v1345_v49 = vmul.f32 -1.442695, %v941_v38 }
 0x418   :  { %v1411_v19 = vpop.eup %1410  ;;  %1412 = vpow2.f32 %v1345_v49 }
 0x419   :  { %v965_v37 = vadd.f32 1.0, %v1411_v19 }
 0x41b   :  { %1414 = vrcp.f32 %v965_v37  ;;  %v977_v35 = vand.u32 2147483648, %v965_v37  ;;  %vm971_vm13 = vweird.f32 %v965_v37  ;;  %v975_v41 = vand.u32 2147483647, %v965_v37 }
 0x41d   :  { %v978_v16 = vor.u32 1.1754944e-38, %v977_v35  ;;  %vm976_vm15 = vcmp.eq.f32.partialorder %v975_v41, 8.507059e+37  ;;  %v1355_v35 = vld [vmem:[%s2505_s0 + $0xb0] sm:$0xff] }
 0x41e   :  { %v1413_v45 = vpop.eup %1412 }
 0x41f   :  { %v945_v52 = vadd.f32 1.0, %v1413_v45 }
 0x421   :  { %1416 = vrcp.f32 %v945_v52  ;;  %v1415_v55 = vpop.eup %1414  ;;  %v957_v1 = vand.u32 2147483648, %v945_v52  ;;  %v955_v8 = vand.u32 2147483647, %v945_v52  ;;  %vm951_vm9 = vweird.f32 %v945_v52 }
 0x422   :  { %v967_v60 = vmul.f32 %v1415_v55, %v965_v37  ;;  %vm972_vm12 = vweird.f32 %v1415_v55 }
 0x423   :  { %v958_v17 = vor.u32 1.1754944e-38, %v957_v1  ;;  %vm956_vm11 = vcmp.eq.f32.partialorder %v955_v8, 8.507059e+37  ;;  %vm973_vm14 = vmor %vm971_vm13, %vm972_vm12 }
 0x424   :  { %v968_v62 = vsub.f32 1.0, %v967_v60 }
 0x426   :  { %v969_v9 = vmul.f32 %v1415_v55, %v968_v62 }
 0x427   :  { %v1417_v25 = vpop.eup %1416 }
 0x428   :  { %v947_v61 = vmul.f32 %v1417_v25, %v945_v52  ;;  %vm952_vm8 = vweird.f32 %v1417_v25  ;;  %v970_v27 = vadd.f32 %v1415_v55, %v969_v9  ;;  %v1350_v52 = vld [vmem:[%s2505_s0 + $0xa0] sm:$0xff] }
 0x429   :  { %vm953_vm10 = vmor %vm951_vm9, %vm952_vm8 }
 0x42a   :  { %v948_v63 = vsub.f32 1.0, %v947_v61  ;;  %v974_v13 = vsel %vm973_vm14, %v1415_v55, %v970_v27 }
 0x42b   :  { %v979_v31 = vsel %vm976_vm15, %v978_v16, %v974_v13 }
 0x42c   :  { %v949_v4 = vmul.f32 %v1417_v25, %v948_v63  ;;  %v984_v34 = vsub.f32 1.0, %v979_v31  ;;  %v986_v47 = vmul.f32 %v979_v31, %v2431_v59 }
 0x42e   :  { %v950_v14 = vadd.f32 %v1417_v25, %v949_v4 }
 0x430   :  { %v954_v21 = vsel %vm953_vm10, %v1417_v25, %v950_v14 }
 0x431   :  { %v959_v23 = vsel %vm956_vm11, %v958_v17, %v954_v21 }
 0x432   :  { %v981_v36 = vmul.f32 %v959_v23, %v939_v18  ;;  %v1354_v18 = vld [vmem:[%s2505_s0 + $0xa8] sm:$0xff] }
 0x434   :  { %v982_v42 = vadd.f32 %v1344_v26, %v981_v36 }
 0x436   :  { %1418 = vtanh.f32 %v982_v42 }
 0x43c   :  { %v1419_v43 = vpop.eup %1418 }
 0x43d   :  { %v985_v44 = vmul.f32 %v1419_v43, %v984_v34 }
 0x43f   :  { %v987_v48 = vadd.f32 %v986_v47, %v985_v44 }
 0x441   :  { %1347 = vst [vmem:[%s2506_s4 + $0x28] sm:$0xff] %v987_v48  ;;  %1058 = vmatmul.f32.vlgmr.msra.gmra.mxu2 %v987_v48  ;;  %1078 = vmatmul.f32.vlgmr.msra.gmra.mxu3 %v987_v48 }
 0x442   :  { %1098 = vmatmul.f32.vlgmr.msrb.gmra.mxu0 %v987_v48 }
 0x4bf   :  { %v1099_v24 = vpop.f32.mrf.mxu0 }
 0x4c0   :  { %v1100_v19 = vadd.f32 %v1099_v24, %v1904_v6 }
 0x4c4   :  { %v1059_v54 = vpop.f32.mrf.mxu2  ;;  %v1079_v58 = vpop.f32.mrf.mxu3 }
 0x4c5   :  { %v1060_v22 = vadd.f32 %v1059_v54, %v2513_v2  ;;  %v1080_v56 = vadd.f32 %v1079_v58, %v2514_v5 }
 0x4c7   :  { %v1102_v46 = vadd.f32 %v1348_v53, %v1060_v22  ;;  %v1122_v33 = vadd.f32 %v1349_v57, %v1080_v56 }
 0x4c9   :  { %v1351_v50 = vmul.f32 -1.442695, %v1102_v46  ;;  %v1352_v28 = vmul.f32 -1.442695, %v1122_v33 }
 0x4cb   :  { %1420 = vpow2.f32 %v1351_v50 }
 0x4cc   :  { %1422 = vpow2.f32 %v1352_v28  ;;  %v1356_v28 = vld [vmem:[%s2505_s0 + $0xb8] sm:$0xff] }
 0x4d1   :  { %v1421_v51 = vpop.eup %1420 }
 0x4d2   :  { %v1423_v30 = vpop.eup %1422  ;;  %v1106_v32 = vadd.f32 1.0, %v1421_v51 }
 0x4d3   :  { %v1126_v40 = vadd.f32 1.0, %v1423_v30 }
 0x4d4   :  { %1424 = vrcp.f32 %v1106_v32  ;;  %v1118_v7 = vand.u32 2147483648, %v1106_v32  ;;  %v1116_v20 = vand.u32 2147483647, %v1106_v32  ;;  %vm1112_vm1 = vweird.f32 %v1106_v32 }
 0x4d5   :  { %1426 = vrcp.f32 %v1126_v40  ;;  %v1138_v25 = vand.u32 2147483648, %v1126_v40  ;;  %vm1132_vm5 = vweird.f32 %v1126_v40  ;;  %v1136_v61 = vand.u32 2147483647, %v1126_v40 }
 0x4d6   :  { %v1119_v49 = vor.u32 1.1754944e-38, %v1118_v7  ;;  %vm1117_vm3 = vcmp.eq.f32.partialorder %v1116_v20, 8.507059e+37 }
 0x4d7   :  { %v1139_v1 = vor.u32 1.1754944e-38, %v1138_v25  ;;  %vm1137_vm7 = vcmp.eq.f32.partialorder %v1136_v61, 8.507059e+37 }
 0x4da   :  { %v1425_v39 = vpop.eup %1424 }
 0x4db   :  { %v1427_v12 = vpop.eup %1426  ;;  %v1108_v59 = vmul.f32 %v1425_v39, %v1106_v32  ;;  %vm1113_vm0 = vweird.f32 %v1425_v39 }
 0x4dc   :  { %v1128_v0 = vmul.f32 %v1427_v12, %v1126_v40  ;;  %vm1114_vm2 = vmor %vm1112_vm1, %vm1113_vm0  ;;  %vm1133_vm4 = vweird.f32 %v1427_v12 }
 0x4dd   :  { %v1109_v3 = vsub.f32 1.0, %v1108_v59  ;;  %vm1134_vm6 = vmor %vm1132_vm5, %vm1133_vm4 }
 0x4de   :  { %v1129_v10 = vsub.f32 1.0, %v1128_v0 }
 0x4df   :  { %v1110_v15 = vmul.f32 %v1425_v39, %v1109_v3 }
 0x4e0   :  { %v1130_v29 = vmul.f32 %v1427_v12, %v1129_v10 }
 0x4e1   :  { %v1111_v38 = vadd.f32 %v1425_v39, %v1110_v15 }
 0x4e2   :  { %v1131_v55 = vadd.f32 %v1427_v12, %v1130_v29 }
 0x4e3   :  { %v1115_v37 = vsel %vm1114_vm2, %v1425_v39, %v1111_v38 }
 0x4e4   :  { %v1120_v45 = vsel %vm1117_vm3, %v1119_v49, %v1115_v37  ;;  %v1135_v63 = vsel %vm1134_vm6, %v1427_v12, %v1131_v55 }
 0x4e5   :  { %v1142_v60 = vmul.f32 %v1120_v45, %v1100_v19  ;;  %v1140_v4 = vsel %vm1137_vm7, %v1139_v1, %v1135_v63 }
 0x4e6   :  { %v1145_v8 = vsub.f32 1.0, %v1140_v4  ;;  %v1147_v14 = vmul.f32 %v1140_v4, %v987_v48 }
 0x4e7   :  { %v1143_v62 = vadd.f32 %v1350_v52, %v1142_v60 }
 0x4e9   :  { %1428 = vtanh.f32 %v1143_v62 }
 0x4ef   :  { %v1429_v9 = vpop.eup %1428 }
 0x4f0   :  { %v1146_v11 = vmul.f32 %v1429_v9, %v1145_v8 }
 0x4f2   :  { %v1148_v17 = vadd.f32 %v1147_v14, %v1146_v11 }
 0x4f4   :  { %1353 = vst [vmem:[%s2506_s4 + $0x30] sm:$0xff] %v1148_v17  ;;  %1219 = vmatmul.f32.vlgmr.msrb.gmra.mxu1 %v1148_v17  ;;  %1239 = vmatmul.f32.vlgmr.msrb.gmra.mxu2 %v1148_v17 }
 0x4f5   :  { %1259 = vmatmul.f32.vlgmr.msrb.gmra.mxu3 %v1148_v17 }
 0x571   :  { %v1220_v21 = vpop.f32.mrf.mxu1 }
 0x572   :  { %v1221_v23 = vadd.f32 %v1220_v21, %v2513_v2 }
 0x574   :  { %v1263_v26 = vadd.f32 %v1354_v18, %v1221_v23 }
 0x576   :  { %v1357_v27 = vmul.f32 -1.442695, %v1263_v26 }
 0x577   :  { %v1240_v36 = vpop.f32.mrf.mxu2 }
 0x578   :  { %1430 = vpow2.f32 %v1357_v27  ;;  %v1241_v41 = vadd.f32 %v1240_v36, %v2514_v5  ;;  %v1260_v58 = vpop.f32.mrf.mxu3 }
 0x579   :  { %v1261_v33 = vadd.f32 %v1260_v58, %v1904_v6 }
 0x57a   :  { %v1283_v42 = vadd.f32 %v1355_v35, %v1241_v41 }
 0x57c   :  { %v1358_v13 = vmul.f32 -1.442695, %v1283_v42 }
 0x57e   :  { %v1431_v16 = vpop.eup %1430  ;;  %1432 = vpow2.f32 %v1358_v13 }
 0x57f   :  { %v1267_v31 = vadd.f32 1.0, %v1431_v16 }
 0x581   :  { %1434 = vrcp.f32 %v1267_v31  ;;  %v1279_v48 = vand.u32 2147483648, %v1267_v31  ;;  %v1277_v54 = vand.u32 2147483647, %v1267_v31  ;;  %vm1273_vm9 = vweird.f32 %v1267_v31 }
 0x583   :  { %v1280_v56 = vor.u32 1.1754944e-38, %v1279_v48  ;;  %vm1278_vm11 = vcmp.eq.f32.partialorder %v1277_v54, 8.507059e+37 }
 0x584   :  { %v1433_v34 = vpop.eup %1432 }
 0x585   :  { %v1287_v43 = vadd.f32 1.0, %v1433_v34 }
 0x587   :  { %v1435_v44 = vpop.eup %1434  ;;  %1436 = vrcp.f32 %v1287_v43  ;;  %v1299_v32 = vand.u32 2147483648, %v1287_v43  ;;  %v1297_v39 = vand.u32 2147483647, %v1287_v43  ;;  %vm1293_vm13 = vweird.f32 %v1287_v43 }
 0x588   :  { %v1269_v2 = vmul.f32 %v1435_v44, %v1267_v31  ;;  %vm1274_vm8 = vweird.f32 %v1435_v44 }
 0x589   :  { %vm1275_vm10 = vmor %vm1273_vm9, %vm1274_vm8  ;;  %v1300_v0 = vor.u32 1.1754944e-38, %v1299_v32  ;;  %vm1298_vm15 = vcmp.eq.f32.partialorder %v1297_v39, 8.507059e+37 }
 0x58a   :  { %v1270_v47 = vsub.f32 1.0, %v1269_v2 }
 0x58c   :  { %v1271_v53 = vmul.f32 %v1435_v44, %v1270_v47 }
 0x58d   :  { %v1437_v57 = vpop.eup %1436 }
 0x58e   :  { %v1289_v22 = vmul.f32 %v1437_v57, %v1287_v43  ;;  %v1272_v5 = vadd.f32 %v1435_v44, %v1271_v53  ;;  %vm1294_vm12 = vweird.f32 %v1437_v57 }
 0x58f   :  { %vm1295_vm14 = vmor %vm1293_vm13, %vm1294_vm12 }
 0x590   :  { %v1290_v46 = vsub.f32 1.0, %v1289_v22  ;;  %v1276_v50 = vsel %vm1275_vm10, %v1435_v44, %v1272_v5 }
 0x591   :  { %v1281_v51 = vsel %vm1278_vm11, %v1280_v56, %v1276_v50 }
 0x592   :  { %v1291_v30 = vmul.f32 %v1437_v57, %v1290_v46  ;;  %v1303_v40 = vmul.f32 %v1281_v51, %v1261_v33 }
 0x594   :  { %v1292_v12 = vadd.f32 %v1437_v57, %v1291_v30  ;;  %v1304_v59 = vadd.f32 %v1356_v28, %v1303_v40 }
 0x596   :  { %v1296_v3 = vsel %vm1295_vm14, %v1437_v57, %v1292_v12  ;;  %1438 = vtanh.f32 %v1304_v59 }
 0x597   :  { %v1301_v6 = vsel %vm1298_vm15, %v1300_v0, %v1296_v3 }
 0x598   :  { %v1306_v7 = vsub.f32 1.0, %v1301_v6  ;;  %v1308_v20 = vmul.f32 %v1301_v6, %v1148_v17 }
 0x59c   :  { %v1439_v10 = vpop.eup %1438 }
 0x59d   :  { %v1307_v15 = vmul.f32 %v1439_v10, %v1306_v7 }
 0x59f   :  { %v1309_v24 = vadd.f32 %v1308_v20, %v1307_v15 }
 0x5a1   :  { %1359 = vst [vmem:[%s2506_s4 + $0x38] sm:$0xff] %v1309_v24 }

</bundles_post_ra>
